<compile_context>
chip_gen: v7x
topology: tpu7x:2x2x1
jax: 0.10.0
libtpu: 0.0.40
codegen_flags: <defaults>
</compile_context>

<pallas_src>
import jax
import jax.numpy as jnp
import numpy as np
from jax.experimental import pallas as pl
from jax.experimental.pallas import tpu as pltpu

NASH_SIZE = 8          # nash.size
S = NASH_SIZE
C_IN = 2               # input planes
NEG_SLOPE = 0.01       # nn.LeakyReLU default

# layer geometry (all 'VALID' convs, stride 1)
C1, K1 = 8, 3
C2, K2 = 4, 2
C3, K3 = 4, 2
H1 = S - (K1 - 1)      # 6
H2 = H1 - (K2 - 1)     # 5
H3 = H2 - (K3 - 1)     # 4
F = C3 * H3 * H3       # 64

BT = 8                 # samples per grid step (BT*S*C_IN == 128 lanes)
LANE = 128


def _round_up(v, m):
    return ((v + m - 1) // m) * m


# ----------------------------------------------------------------------------
# Host-side weight packing.
#
# Activation layout inside the kernel (per layer l):
#   A_l : (H_l, lane_l) f32,  A_l[h, b*(W_l*C_l) + w*C_l + c] = act[b, c, h, w]
#   lanes >= BT*W_l*C_l are zero padding (lane_l is a multiple of 128).
# ----------------------------------------------------------------------------
def _pack_conv(w, bt, win, lane_in, lane_out):
    """Block-structured im2col conv weight: shape (k*lane_in, lane_out)."""
    w = np.asarray(w, np.float32)                  # (cout, cin, k, k) PyTorch
    cout, cin, k, _ = w.shape
    wout = win - k + 1
    rhs = np.zeros((k * lane_in, lane_out), np.float32)
    for kh in range(k):
        for kw in range(k):
            wkk = w[:, :, kh, kw].T                # (cin, cout)
            for b in range(bt):
                for ow in range(wout):
                    w_in = ow + kw
                    p0 = kh * lane_in + (b * win + w_in) * cin
                    q0 = (b * wout + ow) * cout
                    rhs[p0:p0 + cin, q0:q0 + cout] = wkk
    return jnp.asarray(rhs)


def _pack_bias(b, bt, wout, lane_out):
    b = np.asarray(b, np.float32)
    row = np.zeros((1, lane_out), np.float32)
    row[0, :bt * wout * b.shape[0]] = np.tile(b, bt * wout)
    return jnp.asarray(row)


def _pack_fc(wfc, bt, lane_in, lane_out):
    """fc1 weight as (H3*lane_in, lane_out); column b holds sample b's row."""
    wfc_m = np.asarray(wfc, np.float32).reshape(C3, H3, H3)   # (c, h, w) order
    rhs = np.zeros((H3 * lane_in, lane_out), np.float32)
    for h in range(H3):
        for b in range(bt):
            for w in range(H3):
                for c in range(C3):
                    p = h * lane_in + (b * H3 + w) * C3 + c
                    rhs[p, b] = wfc_m[c, h, w]
    return jnp.asarray(rhs)


# ----------------------------------------------------------------------------
# Kernel: conv1+relu -> conv2+relu -> conv3+relu -> fc1, all on the MXU.
# ----------------------------------------------------------------------------
def net_kernel(x_ref, w1_ref, b1_ref, w2_ref, b2_ref, w3_ref, b3_ref,
               wfc_ref, bfc_ref, out_ref):
    def conv_block(a, w_ref, b_ref, k):
        hout = a.shape[0] - k + 1
        # "im2col" over the kernel-height taps only (width/channels handled by
        # the block structure baked into the packed weight matrix).
        lhs = jnp.concatenate([a[kh:kh + hout, :] for kh in range(k)], axis=1)
        y = jnp.dot(lhs, w_ref[...], preferred_element_type=jnp.float32)
        y = y + b_ref[...]                               # bias epilogue
        return jnp.where(y >= 0.0, y, NEG_SLOPE * y)     # LeakyReLU

    a = x_ref[...]                                       # (S, BT*S*C_IN)
    a = conv_block(a, w1_ref, b1_ref, K1)                # (H1, lane1)
    a = conv_block(a, w2_ref, b2_ref, K2)                # (H2, lane2)
    a = conv_block(a, w3_ref, b3_ref, K3)                # (H3, lane3)
    # fc1: flatten the H3 rows along lanes and do one lane-dense matvec.
    flat = jnp.concatenate([a[h:h + 1, :] for h in range(a.shape[0])], axis=1)
    out_ref[0] = (jnp.dot(flat, wfc_ref[...], preferred_element_type=jnp.float32)
                  + bfc_ref[...])                        # (1, LANE)


# ----------------------------------------------------------------------------
# Wrapper
# ----------------------------------------------------------------------------
def net_forward(x, params, bt=BT):
    w1, b1, w2, b2, w3, b3, wfc, bfc = params
    x = x.reshape(-1, C_IN, S, S).astype(jnp.float32)    # x.view(-1, 2, S, S)
    n = x.shape[0]
    n_pad = _round_up(n, bt)
    if n_pad != n:
        x = jnp.concatenate(
            [x, jnp.zeros((n_pad - n, C_IN, S, S), jnp.float32)], axis=0)
    nblk = n_pad // bt

    # lane widths per layer, padded to multiples of 128
    l0 = bt * S * C_IN
    assert l0 % LANE == 0, "BT must keep the input lane width a multiple of 128"
    l1 = _round_up(bt * H1 * C1, LANE)
    l2 = _round_up(bt * H2 * C2, LANE)
    l3 = _round_up(bt * H3 * C3, LANE)

    w1p = _pack_conv(w1, bt, S, l0, l1)
    b1p = _pack_bias(b1, bt, H1, l1)
    w2p = _pack_conv(w2, bt, H1, l1, l2)
    b2p = _pack_bias(b2, bt, H2, l2)
    w3p = _pack_conv(w3, bt, H2, l2, l3)
    b3p = _pack_bias(b3, bt, H3, l3)
    wfcp = _pack_fc(wfc, bt, l3, LANE)
    bfcp = jnp.asarray(np.asarray(bfc, np.float32).reshape(1, 1))

    # (N, C, H, W) -> (H, N*W*C): lane index = n*(W*C) + w*C + c
    x2 = jnp.transpose(x, (2, 0, 3, 1)).reshape(S, n_pad * S * C_IN)

    def fixed(arr):
        return pl.BlockSpec(arr.shape, lambda i: (0, 0))

    out = pl.pallas_call(
        net_kernel,
        out_shape=jax.ShapeDtypeStruct((nblk, 1, LANE), jnp.float32),
        grid=(nblk,),
        in_specs=[
            pl.BlockSpec((S, l0), lambda i: (0, i)),     # batch tile of inputs
            fixed(w1p), fixed(b1p),
            fixed(w2p), fixed(b2p),
            fixed(w3p), fixed(b3p),
            fixed(wfcp), fixed(bfcp),
        ],
        out_specs=pl.BlockSpec((1, 1, LANE), lambda i: (i, 0, 0)),
        compiler_params=pltpu.CompilerParams(
            dimension_semantics=("parallel",)),
    )(x2, w1p, b1p, w2p, b2p, w3p, b3p, wfcp, bfcp)

    out = out[:, 0, :bt].reshape(n_pad, 1)
    return out[:n]


# ----------------------------------------------------------------------------
# Pure-JAX reference mirroring PyTorch semantics (NCHW, VALID convs)
# ----------------------------------------------------------------------------
def ref_forward(x, params):
    w1, b1, w2, b2, w3, b3, wfc, bfc = params
    x = x.reshape(-1, C_IN, S, S).astype(jnp.float32)

    def conv(a, w, b):
        y = jax.lax.conv_general_dilated(
            a, w, (1, 1), 'VALID',
            dimension_numbers=('NCHW', 'OIHW', 'NCHW'))
        y = y + b[None, :, None, None]
        return jnp.where(y >= 0, y, NEG_SLOPE * y)

    a = conv(x, w1, b1)
    a = conv(a, w2, b2)
    a = conv(a, w3, b3)
    flat = a.reshape(a.shape[0], -1)
    return flat @ wfc.T + bfc


def init_params():
    """Deterministic parameter init (shapes follow Net.__init__)."""
    key = jax.random.PRNGKey(0)
    ks = jax.random.split(key, 8)

    def u(k, shape, fan_in):
        bound = 1.0 / np.sqrt(fan_in)
        return jax.random.uniform(k, shape, jnp.float32, -bound, bound)

    w1 = u(ks[0], (C1, C_IN, K1, K1), C_IN * K1 * K1)
    b1 = u(ks[1], (C1,), C_IN * K1 * K1)
    w2 = u(ks[2], (C2, C1, K2, K2), C1 * K2 * K2)
    b2 = u(ks[3], (C2,), C1 * K2 * K2)
    w3 = u(ks[4], (C3, C2, K3, K3), C2 * K3 * K3)
    b3 = u(ks[5], (C3,), C2 * K3 * K3)
    wfc = u(ks[6], (1, F), F)
    bfc = u(ks[7], (1,), F)
    return (w1, b1, w2, b2, w3, b3, wfc, bfc)


if __name__ == "__main__":
    params = init_params()
    N = 16                                   # 2 grid steps of BT=8 samples
    x = jax.random.normal(jax.random.PRNGKey(1), (N, C_IN, S, S), jnp.float32)

    out = jax.block_until_ready(net_forward(x, params))
    expected = ref_forward(x, params)

    assert out.shape == (N, 1), out.shape
    np.testing.assert_allclose(np.asarray(out), np.asarray(expected),
                               rtol=1e-4, atol=1e-4)
    print("KERNEL_OK")
</pallas_src>

<mosaic_0001>
module attributes {stable_mosaic.version = 11 : i64} {
  func.func @net_kernel(%arg0: i32, %arg1: memref<8x128xf32, #tpu.memory_space<vmem>>, %arg2: memref<384x384xf32, #tpu.memory_space<vmem>>, %arg3: memref<1x384xf32, #tpu.memory_space<vmem>>, %arg4: memref<768x256xf32, #tpu.memory_space<vmem>>, %arg5: memref<1x256xf32, #tpu.memory_space<vmem>>, %arg6: memref<512x128xf32, #tpu.memory_space<vmem>>, %arg7: memref<1x128xf32, #tpu.memory_space<vmem>>, %arg8: memref<512x128xf32, #tpu.memory_space<vmem>>, %arg9: memref<1x1xf32, #tpu.memory_space<vmem>>, %arg10: memref<1x1x128xf32, #tpu.memory_space<vmem>>) attributes {dimension_semantics = [#tpu.dimension_semantics<parallel>], iteration_bounds = array<i64: 2>, scalar_prefetch = 0 : i64, scratch_operands = 0 : i64, tpu.core_type = #tpu.core_type<tc>, window_params = [{transform_indices = @transform_0, window_bounds = array<i64: 8, 128>}, {pipeline_mode = #tpu.pipeline_mode<synchronous>, transform_indices = @transform_1, window_bounds = array<i64: 384, 384>}, {pipeline_mode = #tpu.pipeline_mode<synchronous>, transform_indices = @transform_2, window_bounds = array<i64: 1, 384>}, {pipeline_mode = #tpu.pipeline_mode<synchronous>, transform_indices = @transform_3, window_bounds = array<i64: 768, 256>}, {pipeline_mode = #tpu.pipeline_mode<synchronous>, transform_indices = @transform_4, window_bounds = array<i64: 1, 256>}, {pipeline_mode = #tpu.pipeline_mode<synchronous>, transform_indices = @transform_5, window_bounds = array<i64: 512, 128>}, {pipeline_mode = #tpu.pipeline_mode<synchronous>, transform_indices = @transform_6, window_bounds = array<i64: 1, 128>}, {pipeline_mode = #tpu.pipeline_mode<synchronous>, transform_indices = @transform_7, window_bounds = array<i64: 512, 128>}, {pipeline_mode = #tpu.pipeline_mode<synchronous>, transform_indices = @transform_8, window_bounds = array<i64: 1, 1>}, {transform_indices = @transform_9, window_bounds = array<i64: 1, 1, 128>}]} {
    %c0 = arith.constant 0 : index
    %c0_0 = arith.constant 0 : index
    %0 = vector.load %arg1[%c0, %c0_0] : memref<8x128xf32, #tpu.memory_space<vmem>>, vector<8x128xf32>
    %1 = vector.extract_strided_slice %0 {offsets = [0, 0], sizes = [6, 128], strides = [1, 1]} : vector<8x128xf32> to vector<6x128xf32>
    %2 = vector.extract_strided_slice %0 {offsets = [1, 0], sizes = [6, 128], strides = [1, 1]} : vector<8x128xf32> to vector<6x128xf32>
    %3 = vector.extract_strided_slice %0 {offsets = [2, 0], sizes = [6, 128], strides = [1, 1]} : vector<8x128xf32> to vector<6x128xf32>
    %4 = tpu.concatenate %1, %2, %3 in 1 : vector<6x128xf32>, vector<6x128xf32>, vector<6x128xf32> -> vector<6x384xf32>
    %c0_1 = arith.constant 0 : index
    %c0_2 = arith.constant 0 : index
    %5 = vector.load %arg2[%c0_1, %c0_2] : memref<384x384xf32, #tpu.memory_space<vmem>>, vector<384x384xf32>
    %cst = arith.constant dense<0.000000e+00> : vector<6x384xf32>
    %6 = tpu.matmul %4, %5, %cst {dimension_numbers = #tpu.dot_dimension_numbers<[1], [0], [0], [1], [0, 0, 1, 1], [], []>} : vector<6x384xf32>, vector<384x384xf32>, vector<6x384xf32> -> vector<6x384xf32>
    %c0_3 = arith.constant 0 : index
    %c0_4 = arith.constant 0 : index
    %7 = vector.load %arg3[%c0_3, %c0_4] : memref<1x384xf32, #tpu.memory_space<vmem>>, vector<1x384xf32>
    %8 = vector.broadcast %7 : vector<1x384xf32> to vector<6x384xf32>
    %9 = arith.addf %6, %8 : vector<6x384xf32>
    %cst_5 = arith.constant 0.000000e+00 : f32
    %10 = vector.broadcast %cst_5 : f32 to vector<6x384xf32>
    %11 = arith.cmpf oge, %9, %10 : vector<6x384xf32>
    %cst_6 = arith.constant 0.00999999977 : f32
    %12 = vector.broadcast %cst_6 : f32 to vector<6x384xf32>
    %13 = arith.mulf %12, %9 : vector<6x384xf32>
    %14 = arith.select %11, %9, %13 : vector<6x384xi1>, vector<6x384xf32>
    %15 = vector.extract_strided_slice %14 {offsets = [0, 0], sizes = [5, 384], strides = [1, 1]} : vector<6x384xf32> to vector<5x384xf32>
    %16 = vector.extract_strided_slice %14 {offsets = [1, 0], sizes = [5, 384], strides = [1, 1]} : vector<6x384xf32> to vector<5x384xf32>
    %17 = tpu.concatenate %15, %16 in 1 : vector<5x384xf32>, vector<5x384xf32> -> vector<5x768xf32>
    %c0_7 = arith.constant 0 : index
    %c0_8 = arith.constant 0 : index
    %18 = vector.load %arg4[%c0_7, %c0_8] : memref<768x256xf32, #tpu.memory_space<vmem>>, vector<768x256xf32>
    %cst_9 = arith.constant dense<0.000000e+00> : vector<5x256xf32>
    %19 = tpu.matmul %17, %18, %cst_9 {dimension_numbers = #tpu.dot_dimension_numbers<[1], [0], [0], [1], [0, 0, 1, 1], [], []>} : vector<5x768xf32>, vector<768x256xf32>, vector<5x256xf32> -> vector<5x256xf32>
    %c0_10 = arith.constant 0 : index
    %c0_11 = arith.constant 0 : index
    %20 = vector.load %arg5[%c0_10, %c0_11] : memref<1x256xf32, #tpu.memory_space<vmem>>, vector<1x256xf32>
    %21 = vector.broadcast %20 : vector<1x256xf32> to vector<5x256xf32>
    %22 = arith.addf %19, %21 : vector<5x256xf32>
    %cst_12 = arith.constant 0.000000e+00 : f32
    %23 = vector.broadcast %cst_12 : f32 to vector<5x256xf32>
    %24 = arith.cmpf oge, %22, %23 : vector<5x256xf32>
    %cst_13 = arith.constant 0.00999999977 : f32
    %25 = vector.broadcast %cst_13 : f32 to vector<5x256xf32>
    %26 = arith.mulf %25, %22 : vector<5x256xf32>
    %27 = arith.select %24, %22, %26 : vector<5x256xi1>, vector<5x256xf32>
    %28 = vector.extract_strided_slice %27 {offsets = [0, 0], sizes = [4, 256], strides = [1, 1]} : vector<5x256xf32> to vector<4x256xf32>
    %29 = vector.extract_strided_slice %27 {offsets = [1, 0], sizes = [4, 256], strides = [1, 1]} : vector<5x256xf32> to vector<4x256xf32>
    %30 = tpu.concatenate %28, %29 in 1 : vector<4x256xf32>, vector<4x256xf32> -> vector<4x512xf32>
    %c0_14 = arith.constant 0 : index
    %c0_15 = arith.constant 0 : index
    %31 = vector.load %arg6[%c0_14, %c0_15] : memref<512x128xf32, #tpu.memory_space<vmem>>, vector<512x128xf32>
    %cst_16 = arith.constant dense<0.000000e+00> : vector<4x128xf32>
    %32 = tpu.matmul %30, %31, %cst_16 {dimension_numbers = #tpu.dot_dimension_numbers<[1], [0], [0], [1], [0, 0, 1, 1], [], []>} : vector<4x512xf32>, vector<512x128xf32>, vector<4x128xf32> -> vector<4x128xf32>
    %c0_17 = arith.constant 0 : index
    %c0_18 = arith.constant 0 : index
    %33 = vector.load %arg7[%c0_17, %c0_18] : memref<1x128xf32, #tpu.memory_space<vmem>>, vector<1x128xf32>
    %34 = vector.broadcast %33 : vector<1x128xf32> to vector<4x128xf32>
    %35 = arith.addf %32, %34 : vector<4x128xf32>
    %cst_19 = arith.constant 0.000000e+00 : f32
    %36 = vector.broadcast %cst_19 : f32 to vector<4x128xf32>
    %37 = arith.cmpf oge, %35, %36 : vector<4x128xf32>
    %cst_20 = arith.constant 0.00999999977 : f32
    %38 = vector.broadcast %cst_20 : f32 to vector<4x128xf32>
    %39 = arith.mulf %38, %35 : vector<4x128xf32>
    %40 = arith.select %37, %35, %39 : vector<4x128xi1>, vector<4x128xf32>
    %41 = vector.extract_strided_slice %40 {offsets = [0, 0], sizes = [1, 128], strides = [1, 1]} : vector<4x128xf32> to vector<1x128xf32>
    %42 = vector.extract_strided_slice %40 {offsets = [1, 0], sizes = [1, 128], strides = [1, 1]} : vector<4x128xf32> to vector<1x128xf32>
    %43 = vector.extract_strided_slice %40 {offsets = [2, 0], sizes = [1, 128], strides = [1, 1]} : vector<4x128xf32> to vector<1x128xf32>
    %44 = vector.extract_strided_slice %40 {offsets = [3, 0], sizes = [1, 128], strides = [1, 1]} : vector<4x128xf32> to vector<1x128xf32>
    %45 = tpu.concatenate %41, %42, %43, %44 in 1 : vector<1x128xf32>, vector<1x128xf32>, vector<1x128xf32>, vector<1x128xf32> -> vector<1x512xf32>
    %c0_21 = arith.constant 0 : index
    %c0_22 = arith.constant 0 : index
    %46 = vector.load %arg8[%c0_21, %c0_22] : memref<512x128xf32, #tpu.memory_space<vmem>>, vector<512x128xf32>
    %cst_23 = arith.constant dense<0.000000e+00> : vector<1x128xf32>
    %47 = tpu.matmul %45, %46, %cst_23 {dimension_numbers = #tpu.dot_dimension_numbers<[1], [0], [0], [1], [0, 0, 1, 1], [], []>} : vector<1x512xf32>, vector<512x128xf32>, vector<1x128xf32> -> vector<1x128xf32>
    %c0_24 = arith.constant 0 : index
    %c0_25 = arith.constant 0 : index
    %48 = vector.load %arg9[%c0_24, %c0_25] : memref<1x1xf32, #tpu.memory_space<vmem>>, vector<1x1xf32>
    %49 = vector.broadcast %48 : vector<1x1xf32> to vector<1x128xf32>
    %50 = arith.addf %47, %49 : vector<1x128xf32>
    %c0_26 = arith.constant 0 : index
    %c0_27 = arith.constant 0 : index
    %c0_28 = arith.constant 0 : index
    %51 = vector.load %arg10[%c0_26, %c0_27, %c0_28] : memref<1x1x128xf32, #tpu.memory_space<vmem>>, vector<1x1x128xf32>
    %52 = vector.shape_cast %51 : vector<1x1x128xf32> to vector<1x128xf32>
    %53 = vector.shape_cast %50 : vector<1x128xf32> to vector<1x1x128xf32>
    tpu.vector_store %arg10[%c0_26, %c0_27, %c0_28], %53 {strides = array<i32>} : memref<1x1x128xf32, #tpu.memory_space<vmem>>, vector<1x1x128xf32>,
    return
  }
  func.func @transform_0(%arg0: i32) -> (i32, i32) {
    %c0_i32 = arith.constant 0 : i32
    %c0_i32_0 = arith.constant 0 : i32
    return %c0_i32, %arg0 : i32, i32
  }
  func.func @transform_1(%arg0: i32) -> (i32, i32) {
    %c0_i32 = arith.constant 0 : i32
    %c0_i32_0 = arith.constant 0 : i32
    %c0_i32_1 = arith.constant 0 : i32
    return %c0_i32, %c0_i32_0 : i32, i32
  }
  func.func @transform_2(%arg0: i32) -> (i32, i32) {
    %c0_i32 = arith.constant 0 : i32
    %c0_i32_0 = arith.constant 0 : i32
    %c0_i32_1 = arith.constant 0 : i32
    return %c0_i32, %c0_i32_0 : i32, i32
  }
  func.func @transform_3(%arg0: i32) -> (i32, i32) {
    %c0_i32 = arith.constant 0 : i32
    %c0_i32_0 = arith.constant 0 : i32
    %c0_i32_1 = arith.constant 0 : i32
    return %c0_i32, %c0_i32_0 : i32, i32
  }
  func.func @transform_4(%arg0: i32) -> (i32, i32) {
    %c0_i32 = arith.constant 0 : i32
    %c0_i32_0 = arith.constant 0 : i32
    %c0_i32_1 = arith.constant 0 : i32
    return %c0_i32, %c0_i32_0 : i32, i32
  }
  func.func @transform_5(%arg0: i32) -> (i32, i32) {
    %c0_i32 = arith.constant 0 : i32
    %c0_i32_0 = arith.constant 0 : i32
    %c0_i32_1 = arith.constant 0 : i32
    return %c0_i32, %c0_i32_0 : i32, i32
  }
  func.func @transform_6(%arg0: i32) -> (i32, i32) {
    %c0_i32 = arith.constant 0 : i32
    %c0_i32_0 = arith.constant 0 : i32
    %c0_i32_1 = arith.constant 0 : i32
    return %c0_i32, %c0_i32_0 : i32, i32
  }
  func.func @transform_7(%arg0: i32) -> (i32, i32) {
    %c0_i32 = arith.constant 0 : i32
    %c0_i32_0 = arith.constant 0 : i32
    %c0_i32_1 = arith.constant 0 : i32
    return %c0_i32, %c0_i32_0 : i32, i32
  }
  func.func @transform_8(%arg0: i32) -> (i32, i32) {
    %c0_i32 = arith.constant 0 : i32
    %c0_i32_0 = arith.constant 0 : i32
    %c0_i32_1 = arith.constant 0 : i32
    return %c0_i32, %c0_i32_0 : i32, i32
  }
  func.func @transform_9(%arg0: i32) -> (i32, i32, i32) {
    %c0_i32 = arith.constant 0 : i32
    %c0_i32_0 = arith.constant 0 : i32
    %c0_i32_1 = arith.constant 0 : i32
    return %arg0, %c0_i32, %c0_i32_0 : i32, i32, i32
  }
}

</mosaic_0001>

<bundles_post_ra>
// kernel: tpu_custom_call.1
= control target key start
LH: loop header
LB: loop body
LE: loop exit
PB: predicated region body
PF: predicated region fallthrough
CT: control target
= control target key end

     0   :  { %s3307_s0 = inlined_call_operand.hbm [shape: f32[8,256], index: 0, kind: input, shape index: {}]   ;;  %s3308_s1 = inlined_call_operand.hbm [shape: f32[384,384], index: 1, kind: input, shape index: {}]   ;;  %s3309_s2 = inlined_call_operand.vmem [shape: f32[1,384], index: 2, kind: input, shape index: {}]   ;;  %s3310_s3 = inlined_call_operand.hbm [shape: f32[768,256], index: 3, kind: input, shape index: {}]   ;;  %s3311_s4 = inlined_call_operand.vmem [shape: f32[1,256], index: 4, kind: input, shape index: {}]   ;;  %s3312_s5 = inlined_call_operand.hbm [shape: f32[512,128], index: 5, kind: input, shape index: {}]   ;;  %s3313_s6 = inlined_call_operand.vmem [shape: f32[1,128], index: 6, kind: input, shape index: {}]   ;;  %s3314_s7 = inlined_call_operand.hbm [shape: f32[512,128], index: 7, kind: input, shape index: {}]   ;;  %s3315_s8 = inlined_call_operand.<no memory space> [shape: f32[1,1], index: 8, kind: input, shape index: {}]   ;;  %s3316_s9 = inlined_call_operand.hbm [shape: f32[2,1,128], index: 9, kind: output, shape index: {}]  }
   0x1   :  { %3322 = sst [smem:[#allocation17_spill]] %s3308_s1  ;;  %v14_v0 = vstv %s3315_s8 }
   0x2   :  { %15 = vst [vmem:[#allocation2] sm:$0x1] %v14_v0 }
   0x3   :  { %16 = vsyncpa [#allocation4], 0 }
   0x4   :  { %18 = vsyncpa [#allocation4 + $0x1], 0 }
   0x5   :  { %19 = vsyncpa [#allocation7], 0 }
   0x6   :  { %20 = vsyncpa [#allocation10], 0 }
   0x7   :  { %21 = vsyncpa [#allocation5], 0 }
   0x8   :  { %23 = vsyncpa [#allocation5 + $0x1], 0  ;;  %s2969_s11 = smov 0   ;;  %s2971_s12 = smov 0  }
   0x9   :  { %s2973_s13 = smov 0   ;;  %s2975_s14 = smov 0  }
   0xa LB: > { %s2900_s8 = smov [#allocation6]   ;;  %s2990_s16 = sadd.s32 4294967295, %s2898_s14   ;;  %s2898_s14 = sphi %s2975_s14, %s3346_s14   ;;  %s2894_s13 = sphi %s2973_s13, %s3345_s13   ;;  %s2890_s12 = sphi %s2971_s12, %s3344_s12   ;;  %s2886_s11 = sphi %s2969_s11, %s3343_s11  }
   0xb   : > { %s266_s15 = sshll.u32 %s2900_s8, 4  ;;  %p1857_p0 = scmp.ge.s32.totalorder %s2898_s14, 1  ;;  %s2995_s15 = int_to_ptr.vmem [resolvable:$true] %s266_s15 }
   0xc   : > { %p3317_p1 = scmp.eq.s32.totalorder %s2990_s16, 0  ;;  %p254_p2 = scmp.lt.s32.totalorder %s2898_s14, 3 }
   0xd   : > { %s2901_s18 = smov [#allocation9]   ;;  %s2902_s21 = smov [#allocation8]  }
   0xe   : > { %p2997_p3 = pnand %p1857_p0, %p254_p2  ;;  %s298_s19 = sshll.u32 %s2901_s18, 4  ;;  %s3010_s19 = int_to_ptr.vmem [resolvable:$true] %s298_s19 }
   0xf   : > { %s3012_s22 = sshll.u32 %s2902_s21, 4  ;;  %s3325_s1 = sld [smem:[#allocation17_spill]]  ;;  %s283_s22 = int_to_ptr.vmem [resolvable:$true] %s3012_s22 }
  0x10   : > { %s3323_s17 = scalar_select %p2997_p3, 1, 0 }
  0x11   : > { %p2604_p5 = pneg %p2997_p3 }
  0x13   : > { %p3006_p6 = pnand %p2604_p5, %p3317_p1 }
  0x15   : > { %s2682_s25 = scalar_lea.hbm %s3325_s1, 18432  ;;  %p3022_p8 = pneg %p3006_p6 }
  0x16   : > { %p2683_p7 = scmp.ne.s32.totalorder %s3325_s1, %s2682_s25  ;;  %p2689_p11 = scmp.lt.u32.totalorder %s2682_s25, %s3325_s1 }
  0x18   : > { %p2685_p9 = pnand %p3022_p8, %p2683_p7 }
  0x1a   : > { %p2686_p10 = pneg %p2685_p9 }
  0x1c   : > { %p2691_p12 = pnand %p2689_p11, %p2686_p10 }
  0x1e   : > { %2694 = shalt.err (!%p2691_p12)
}
  0x1f   : > { %s2695_s10 = scalar_lea.vmem %s2995_s15, 18432  ;;  %p2703_p5 = scmp.lt.s32.totalorder %s2995_s15, %s2995_s15 }
  0x20   : > { %p2696_p13 = scmp.ne.s32.totalorder %s2995_s15, %s2695_s10  ;;  %p2704_p4 = scmp.lt.s32.totalorder %s2695_s10, %s2695_s10 }
  0x22   : > { %p2698_p0 = pnand %p2696_p13, %p3022_p8  ;;  %p2705_p7 = por %p2704_p4, %p2703_p5 }
  0x24   : > { %p2699_p2 = pneg %p2698_p0 }
  0x26   : > { %p2706_p9 = pnand %p2705_p7, %p2699_p2 }
  0x28   : > { %2709 = shalt.err (!%p2706_p9)
}
  0x29   : > { %s2903_s8 = smov 384   ;;  %s2904_s18 = smov 24  }
  0x2a   : > { %2607 = dma.hbm_to_vmem [thread:$0]  (!%p3006_p6), %s3325_s1, 18432, %s2995_s15, [#allocation7], %s2903_s8, %s2903_s8, %s2904_s18  }
  0x2b   : > { %s2710_s26 = scalar_lea.hbm %s3312_s5, 8192 }
  0x2c   : > { %p2711_p4 = scmp.ne.s32.totalorder %s3312_s5, %s2710_s26  ;;  %p2717_p12 = scmp.lt.u32.totalorder %s2710_s26, %s3312_s5 }
  0x2e   : > { %p2713_p10 = pnand %p2711_p4, %p3022_p8 }
  0x30   : > { %p2714_p11 = pneg %p2713_p10 }
  0x32   : > { %p2719_p13 = pnand %p2717_p12, %p2714_p11 }
  0x34   : > { %2722 = shalt.err (!%p2719_p13)
}
  0x35   : > { %s2723_s15 = scalar_lea.vmem %s3010_s19, 8192  ;;  %p2731_p7 = scmp.lt.s32.totalorder %s3010_s19, %s3010_s19 }
  0x36   : > { %p2724_p0 = scmp.ne.s32.totalorder %s3010_s19, %s2723_s15  ;;  %p2732_p9 = scmp.lt.s32.totalorder %s2723_s15, %s2723_s15 }
  0x38   : > { %p2726_p2 = pnand %p2724_p0, %p3022_p8  ;;  %p2733_p4 = por %p2732_p9, %p2731_p7 }
  0x3a   : > { %p2727_p5 = pneg %p2726_p2 }
  0x3c   : > { %p2734_p10 = pnand %p2733_p4, %p2727_p5 }
  0x3e   : > { %2737 = shalt.err (!%p2734_p10)
}
  0x3f   : > { %s3319_s8 = smov 128   ;;  %s3320_s18 = smov 8  }
  0x40   : > { %2613 = dma.hbm_to_vmem [thread:$0]  (!%p3006_p6), %s3312_s5, 8192, %s3010_s19, [#allocation10], %s3319_s8, %s3319_s8, %s3320_s18  }
  0x41   : > { %s2738_s26 = scalar_lea.hbm %s3310_s3, 24576 }
  0x42   : > { %p2739_p11 = scmp.ne.s32.totalorder %s3310_s3, %s2738_s26  ;;  %p2745_p0 = scmp.lt.u32.totalorder %s2738_s26, %s3310_s3 }
  0x44   : > { %p2741_p12 = pnand %p2739_p11, %p3022_p8 }
  0x46   : > { %p2742_p13 = pneg %p2741_p12 }
  0x48   : > { %p2747_p2 = pnand %p2745_p0, %p2742_p13 }
  0x4a   : > { %2750 = shalt.err (!%p2747_p2)
}
  0x4b   : > { %s2751_s15 = scalar_lea.vmem %s283_s22, 24576  ;;  %p2759_p4 = scmp.lt.s32.totalorder %s283_s22, %s283_s22 }
  0x4c   : > { %p2752_p5 = scmp.ne.s32.totalorder %s283_s22, %s2751_s15  ;;  %p2760_p10 = scmp.lt.s32.totalorder %s2751_s15, %s2751_s15 }
  0x4e   : > { %p2754_p7 = pnand %p2752_p5, %p3022_p8  ;;  %p2761_p1 = por %p2760_p10, %p2759_p4 }
  0x50   : > { %p2755_p9 = pneg %p2754_p7 }
  0x52   : > { %p2762_p3 = pnand %p2761_p1, %p2755_p9 }
  0x54   : > { %2765 = shalt.err (!%p2762_p3)
}
  0x55   : > { %s2907_s19 = smov 256   ;;  %s2908_s21 = smov 16  }
  0x56   : > { %2610 = dma.hbm_to_vmem [thread:$0]  (!%p3006_p6), %s3310_s3, 24576, %s283_s22, [#allocation7], %s2907_s19, %s2907_s19, %s2908_s21  }
  0x57   : > { %s2909_s25 = smov [#allocation11]   ;;  %s2766_s30 = scalar_lea.hbm %s3314_s7, 8192 }
  0x58   : > { %s314_s26 = sshll.u32 %s2909_s25, 4  ;;  %p2767_p1 = scmp.ne.s32.totalorder %s3314_s7, %s2766_s30  ;;  %s315_s26 = int_to_ptr.vmem [resolvable:$true] %s314_s26 }
  0x59   : > { %p2773_p12 = scmp.lt.u32.totalorder %s2766_s30, %s3314_s7 }
  0x5a   : > { %p2769_p3 = pnand %p2767_p1, %p3022_p8 }
  0x5c   : > { %p2770_p11 = pneg %p2769_p3 }
  0x5e   : > { %p2775_p13 = pnand %p2773_p12, %p2770_p11 }
  0x60   : > { %2778 = shalt.err (!%p2775_p13)
}
  0x61   : > { %s2779_s22 = scalar_lea.vmem %s315_s26, 8192  ;;  %p2787_p7 = scmp.lt.s32.totalorder %s315_s26, %s315_s26 }
  0x62   : > { %p2780_p0 = scmp.ne.s32.totalorder %s315_s26, %s2779_s22  ;;  %p2788_p9 = scmp.lt.s32.totalorder %s2779_s22, %s2779_s22 }
  0x64   : > { %p2782_p2 = pnand %p2780_p0, %p3022_p8  ;;  %p2789_p4 = por %p2788_p9, %p2787_p7 }
  0x66   : > { %p2783_p5 = pneg %p2782_p2 }
  0x68   : > { %p2790_p10 = pnand %p2789_p4, %p2783_p5 }
  0x6a   : > { %2793 = shalt.err (!%p2790_p10)
}
  0x6b   : > { %s3327_s19 = smov 8   ;;  %s3328_s21 = smov 128  }
  0x6c   : > { %2616 = dma.hbm_to_vmem [thread:$0]  (!%p3006_p6), %s3314_s7, 8192, %s315_s26, [#allocation10], %s3328_s21, %s3328_s21, %s3327_s19  }
  0x6d   : > { %s1856_s20 = sadd.s32 4294967294, %s2898_s14   ;;  %s3111_s28 = sadd.s32 1, %s2898_s14  }
  0x6e   : > { %s33_s23 = ssub.s32 %s2898_s14, %s3111_s28  ;;  %s36_s24 = sadd.s32 1, %s2894_s13 }
  0x6f   : > { %p34_p8 = scmp.eq.s32.totalorder %s33_s23, 0  ;;  %p43_p1 = scmp.ne.s32.totalorder %s2894_s13, %s2890_s12 }
  0x70   : > { %p44_p3 = scmp.eq.s32.totalorder %s2898_s14, 0  ;;  %p49_p11 = scmp.ne.s32.totalorder %s2890_s12, %s2886_s11 }
  0x71   : > { %s3122_s25 = scalar_select %p34_p8, %s2894_s13, %s36_s24  }
  0x72   : > { %p3124_p12 = por %p44_p3, %p43_p1  ;;  %p3330_p13 = scmp.eq.s32.totalorder %s2990_s16, 0 }
  0x73   : > { %p241_p0 = scmp.eq.s32.totalorder %s2990_s16, 1  ;;  %p247_p2 = scmp.eq.s32.totalorder %s1856_s20, 1 }
  0x74   : > { %p3130_p6 = por %p3330_p13, %p49_p11  ;;  %p2629_p5 = scmp.lt.s32.totalorder %s2898_s14, 2 }
  0x75   : > { %s331_s29 = sand.u32 1, %s2894_s13   ;;  %p3137_p7 = por %p241_p0, %p43_p1 }
  0x76   : > { %p3141_p9 = por %p247_p2, %p49_p11  ;;  %s1863_s15 = sshll.u32 %s331_s29, 3 }
  0x77   : > { %s3332_s30 = scalar_select %p3137_p7, 1, 0 }
  0x78   : > { %s3333_s10 = scalar_select %p3141_p9, 1, 0 }
  0x79   : > { %s1864_s22 = sshll.u32 %s2898_s14, 7  ;;  %s335_s18 = scalar_lea.vmem [#allocation3], %s1863_s15 }
  0x7a   : > { %s3149_s8 = scalar_lea.hbm %s3307_s0, %s1864_s22  ;;  %s342_s20 = sshll.u32 %s335_s18, 4  ;;  %s3151_s20 = int_to_ptr.vmem [resolvable:$true] %s342_s20 }
  0x7b   : > { %p3155_p4 = pnand %p2629_p5, %p3124_p12  ;;  %s332_s24 = scalar_lea.sflag [#allocation4], %s331_s29 }
  0x7c   : > { %s2794_s1 = scalar_lea.hbm %s3149_s8, 128  ;;  %s2799_s19 = scalar_lea.hbm %s3307_s0, 256 }
  0x7d   : > { %p2795_p10 = scmp.ne.s32.totalorder %s3149_s8, %s2794_s1  ;;  %p2796_p8 = pneg %p3155_p4 }
  0x7e   : > { %p2800_p11 = scmp.lt.u32.totalorder %s3149_s8, %s3307_s0  ;;  %p2801_p12 = scmp.lt.u32.totalorder %s2799_s19, %s2794_s1 }
  0x7f   : > { %p2797_p1 = pnand %p2796_p8, %p2795_p10  ;;  %p2803_p0 = scmp.lt.u32.totalorder %s2794_s1, %s3149_s8 }
  0x80   : > { %p2802_p13 = por %p2801_p12, %p2800_p11 }
  0x81   : > { %p2798_p3 = pneg %p2797_p1 }
  0x82   : > { %p2804_p2 = por %p2803_p0, %p2802_p13 }
  0x84   : > { %p2805_p5 = pnand %p2804_p2, %p2798_p3 }
  0x86   : > { %2808 = shalt.err (!%p2805_p5)
}
  0x87   : > { %s2809_s29 = scalar_lea.vmem %s3151_s20, 128  ;;  %s2910_s18 = smov [#allocation3]  }
  0x88   : > { %p2810_p10 = scmp.ne.s32.totalorder %s3151_s20, %s2809_s29  ;;  %s2814_s15 = sshll.u32 %s2910_s18, 4  ;;  %s2815_s15 = int_to_ptr.vmem [resolvable:$false] %s2814_s15 }
  0x89   : > { %s2816_s22 = scalar_lea.vmem %s2815_s15, 256  ;;  %p2817_p7 = scmp.lt.s32.totalorder %s3151_s20, %s2815_s15 }
  0x8a   : > { %p2812_p1 = pnand %p2810_p10, %p2796_p8  ;;  %p2818_p11 = scmp.lt.s32.totalorder %s2816_s22, %s2809_s29 }
  0x8c   : > { %p2813_p9 = pneg %p2812_p1  ;;  %p2819_p12 = por %p2818_p11, %p2817_p7 }
  0x8e   : > { %p2820_p13 = pnand %p2819_p12, %p2813_p9 }
  0x90   : > { %2823 = shalt.err (!%p2820_p13)
}
  0x91   : > { %2620 = dma.hbm_to_vmem [thread:$0]  (!%p3155_p4), %s3149_s8, 128, %s3151_s20, %s332_s24  }
  0x92   : > { %p3335_p3 = scmp.ne.s32.totalorder %s3323_s17, 0 }
  0x93   : > { %s3187_s1 = sand.u32 (!%p3335_p3), 1, %s2890_s12  }
  0x94   : > { %351 = sbr.rel (%p3335_p3) target bundleno = 1345 (0x541), region = 56  ;;  %s1866_s19 = sshll.u32 (!%p3335_p3), %s3187_s1, 3 }
  0x95   : > { %s354_s27 = scalar_lea.sflag (!%p3335_p3), [#allocation4], %s3187_s1  ;;  %s3191_s21 = scalar_lea.vmem (!%p3335_p3), [#allocation3], %s1866_s19 }
  0x9b   : > { %2869 = dma.done.wait (%p3130_p6), %s354_s27, 128  }
  0x9c   : > { %2871 = vsyncadd (%p3130_p6), %s354_s27, 4294967168  ;;  %p3336_p7 = scmp.eq.s32.totalorder %s2990_s16, 0 }
  0x9e   : > { %2873 = dma.done.wait (%p3336_p7), [#allocation7], 43008   ;;  %p3337_p9 = pmov %p3336_p7 }
  0x9f   : > { %p3338_p4 = pmov %p3336_p7 }
  0xa0   : > { %2875 = vsyncadd (%p3337_p9), [#allocation7], 4294924288 }
  0xa1   : > { %2877 = dma.done.wait (%p3338_p4), [#allocation10], 16384   ;;  %p3339_p8 = pmov %p3338_p4 }
  0xa2   : > { %v414_v1 = vld [vmem:[#allocation6 + $0x8] sm:$0xff]  ;;  %v417_v2 = vld [vmem:[#allocation6 + $0x20] sm:$0xff]  ;;  %v416_v5 = vld [vmem:[#allocation6 + $0x18] sm:$0xff]  ;;  %vm2912_vm0 = vmmov 0   ;;  %s1872_s29 = sshll.u32 %s2990_s16, 4  ;;  %s406_s18 = scalar_lea.vmem [#allocation12], %s3187_s1 }
  0xa3   : > { %2879 = vsyncadd (%p3339_p8), [#allocation10], 4294950912  ;;  %v413_v3 = vld [vmem:[#allocation6] sm:$0xff]  ;;  %v2102_v4 = vpack.c.bf16 %v417_v2, %v414_v1  ;;  %v420_v6 = vld [vmem:[#allocation6 + $0x38] sm:$0xff]  ;;  %s1752_s15 = sshll.u32 %s406_s18, 4  ;;  %s3263_s27 = scalar_lea.hbm %s3316_s9, %s1872_s29  ;;  %s3265_s15 = int_to_ptr.vmem [resolvable:$true] %s1752_s15 }
  0xa4   : > { %v423_v7 = vld [vmem:[#allocation6 + $0x50] sm:$0xff]  ;;  %v2104_v8 = vpack.c.bf16 %v416_v5, %v413_v3  ;;  %v422_v11 = vld [vmem:[#allocation6 + $0x48] sm:$0xff]  ;;  %v429_v13 = vld [vmem:[#allocation6 + $0x80] sm:$0xff]  ;;  %s2824_s17 = scalar_lea.vmem %s3265_s15, 16  ;;  %p3340_p0 = scmp.ne.s32.totalorder %s3332_s30, 0 }
  0xa5   : > { %v2106_v9 = vpack.c.bf16 %v423_v7, %v420_v6  ;;  %v419_v10 = vld [vmem:[#allocation6 + $0x30] sm:$0xff]  ;;  %v426_v12 = vld [vmem:[#allocation6 + $0x68] sm:$0xff]  ;;  %2103 = vmatprep.subr.bf16.mxu0 %v2102_v4  ;;  %v425_v16 = vld [vmem:[#allocation6 + $0x60] sm:$0xff]  ;;  %p2825_p6 = scmp.ne.s32.totalorder %s3265_s15, %s2824_s17  ;;  %s2915_s16 = smov [#allocation12]  }
  0xa6   : > { %2105 = vmatpush1.bf16.msra.mxu0 %v2104_v8  ;;  %v2108_v14 = vpack.c.bf16 %v422_v11, %v419_v10  ;;  %v2110_v15 = vpack.c.bf16 %v429_v13, %v426_v12  ;;  %v428_v17 = vld [vmem:[#allocation6 + $0x78] sm:$0xff]  ;;  %v435_v19 = vld [vmem:[#allocation6 + $0xb0] sm:$0xff]  ;;  %v434_v23 = vld [vmem:[#allocation6 + $0xa8] sm:$0xff]  ;;  %s2828_s26 = sshll.u32 %s2915_s16, 4  ;;  %s2829_s26 = int_to_ptr.vmem [resolvable:$false] %s2828_s26 }
  0xa7   : > { %2107 = vmatprep.subr.bf16.mxu0 %v2106_v9  ;;  %v432_v18 = vld [vmem:[#allocation6 + $0x98] sm:$0xff]  ;;  %v2112_v20 = vpack.c.bf16 %v428_v17, %v425_v16  ;;  %v431_v22 = vld [vmem:[#allocation6 + $0x90] sm:$0xff]  ;;  %v438_v24 = vld [vmem:[#allocation6 + $0xc8] sm:$0xff]  ;;  %p2826_p2 = pnand %p2825_p6, %p3340_p0  ;;  %s2830_s8 = scalar_lea.vmem %s2829_s26, 32 }
  0xa8   : > { %v2114_v21 = vpack.c.bf16 %v435_v19, %v432_v18  ;;  %v441_v25 = vld [vmem:[#allocation6 + $0xe0] sm:$0xff]  ;;  %v2116_v26 = vpack.c.bf16 %v434_v23, %v431_v22  ;;  %v440_v29 = vld [vmem:[#allocation6 + $0xd8] sm:$0xff]  ;;  %v447_v31 = vld [vmem:[#allocation6 + $0x110] sm:$0xff]  ;;  %p2831_p10 = scmp.lt.s32.totalorder %s3265_s15, %s2829_s26  ;;  %p2832_p1 = scmp.lt.s32.totalorder %s2830_s8, %s2824_s17 }
  0xa9   : > { %v2118_v27 = vpack.c.bf16 %v441_v25, %v438_v24  ;;  %v437_v28 = vld [vmem:[#allocation6 + $0xc0] sm:$0xff]  ;;  %v444_v30 = vld [vmem:[#allocation6 + $0xf8] sm:$0xff]  ;;  %v443_v34 = vld [vmem:[#allocation6 + $0xf0] sm:$0xff]  ;;  %p2827_p5 = pneg %p2826_p2 }
  0xaa   : > { %2109 = vmatpush1.bf16.msra.mxu0 %v2108_v14  ;;  %v2120_v32 = vpack.c.bf16 %v440_v29, %v437_v28  ;;  %v2122_v33 = vpack.c.bf16 %v447_v31, %v444_v30  ;;  %v446_v35 = vld [vmem:[#allocation6 + $0x108] sm:$0xff]  ;;  %v453_v37 = vld [vmem:[#allocation6 + $0x140] sm:$0xff]  ;;  %v452_v41 = vld [vmem:[#allocation6 + $0x138] sm:$0xff]  ;;  %p2833_p11 = por %p2832_p1, %p2831_p10 }
  0xab   : > { %2111 = vmatprep.subr.bf16.mxu0 %v2110_v15  ;;  %v450_v36 = vld [vmem:[#allocation6 + $0x128] sm:$0xff]  ;;  %v2124_v38 = vpack.c.bf16 %v446_v35, %v443_v34  ;;  %v449_v40 = vld [vmem:[#allocation6 + $0x120] sm:$0xff]  ;;  %v3206_v42 = vld [vmem:[%s3191_s21] sm:$0xff]  ;;  %s1740_s21 = scalar_lea.sflag [#allocation5], %s3187_s1 }
  0xac   : > { %v2126_v39 = vpack.c.bf16 %v453_v37, %v450_v36  ;;  %v456_v43 = vld [vmem:[#allocation6 + $0x158] sm:$0xff]  ;;  %v459_v44 = vld [vmem:[#allocation6 + $0x170] sm:$0xff]  ;;  %v409_v45 = vrot.slane %v3206_v42, 1  ;;  %v2128_v46 = vpack.c.bf16 %v452_v41, %v449_v40  ;;  %v466_v49 = vld [vmem:[#allocation6 + $0x1a8] sm:$0xff]  ;;  %p2834_p12 = pnand %p2833_p11, %p2827_p5 }
  0xad   : > { %v455_v47 = vld [vmem:[#allocation6 + $0x150] sm:$0xff]  ;;  %v2130_v50 = vpack.c.bf16 %v459_v44, %v456_v43  ;;  %v458_v51 = vld [vmem:[#allocation6 + $0x168] sm:$0xff]  ;;  %v465_v56 = vld [vmem:[#allocation6 + $0x1a0] sm:$0xff] }
  0xae   : > { %2113 = vmatpush1.bf16.msra.mxu0 %v2112_v20  ;;  %638 = vmatprep.mubr.f32.mxu0 %v409_v45  ;;  %v463_v48 = vld [vmem:[#allocation6 + $0x190] sm:$0xff]  ;;  %v418_v54 = vld [vmem:[#allocation6 + $0x28] sm:$0xff]  ;;  %v469_v58 = vld [vmem:[#allocation6 + $0x1c0] sm:$0xff]  ;;  %v2132_v61 = vpack.c.bf16 %v458_v51, %v455_v47 }
  0xaf   : > { %2115 = vmatprep.subr.bf16.mxu0 %v2114_v21  ;;  %v2198_v52 = vpack.c.bf16 %v466_v49, %v463_v48  ;;  %v415_v53 = vld [vmem:[#allocation6 + $0x10] sm:$0xff]  ;;  %780 = vmatprep.mubr.f32.mxu1 %v409_v45  ;;  %v462_v55 = vld [vmem:[#allocation6 + $0x188] sm:$0xff]  ;;  %v472_v59 = vld [vmem:[#allocation6 + $0x1d8] sm:$0xff] }
  0xb0   : > { %v2200_v57 = vpack.c.bf16 %v418_v54, %v415_v53  ;;  %v421_v60 = vld [vmem:[#allocation6 + $0x40] sm:$0xff]  ;;  %v464_v63 = vld [vmem:[#allocation6 + $0x198] sm:$0xff]  ;;  %v2202_v0 = vpack.c.bf16 %v472_v59, %v469_v58  ;;  %v2134_v2 = vpack.c.bf16 %v465_v56, %v462_v55  ;;  %v471_v4 = vld [vmem:[#allocation6 + $0x1d0] sm:$0xff] }
  0xb1   : > { %2199 = vmatprep.subr.bf16.mxu1 %v2198_v52  ;;  %v461_v62 = vld [vmem:[#allocation6 + $0x180] sm:$0xff]  ;;  %v424_v1 = vld [vmem:[#allocation6 + $0x58] sm:$0xff]  ;;  %v475_v6 = vld [vmem:[#allocation6 + $0x1f0] sm:$0xff] }
  0xb2   : > { %2117 = vmatpush1.bf16.msra.mxu0 %v2116_v26  ;;  %2201 = vmatpush3.bf16.msra.mxu1 %v2200_v57  ;;  %v468_v3 = vld [vmem:[#allocation6 + $0x1b8] sm:$0xff]  ;;  %v2204_v5 = vpack.c.bf16 %v424_v1, %v421_v60  ;;  %v478_v7 = vld [vmem:[#allocation6 + $0x208] sm:$0xff]  ;;  %v427_v8 = vld [vmem:[#allocation6 + $0x70] sm:$0xff]  ;;  %v2136_v11 = vpack.c.bf16 %v464_v63, %v461_v62 }
  0xb3   : > { %2119 = vmatprep.subr.bf16.mxu0 %v2118_v27  ;;  %2203 = vmatprep.subr.bf16.mxu1 %v2202_v0  ;;  %v430_v9 = vld [vmem:[#allocation6 + $0x88] sm:$0xff]  ;;  %v2206_v10 = vpack.c.bf16 %v478_v7, %v475_v6  ;;  %v467_v12 = vld [vmem:[#allocation6 + $0x1b0] sm:$0xff]  ;;  %v481_v14 = vld [vmem:[#allocation6 + $0x220] sm:$0xff]  ;;  %v2138_v16 = vpack.c.bf16 %v471_v4, %v468_v3 }
  0xb4   : > { %v2208_v13 = vpack.c.bf16 %v430_v9, %v427_v8  ;;  %v484_v15 = vld [vmem:[#allocation6 + $0x238] sm:$0xff]  ;;  %v470_v17 = vld [vmem:[#allocation6 + $0x1c8] sm:$0xff]  ;;  %v433_v19 = vld [vmem:[#allocation6 + $0xa0] sm:$0xff] }
  0xb5   : > { %v2210_v18 = vpack.c.bf16 %v484_v15, %v481_v14  ;;  %v436_v20 = vld [vmem:[#allocation6 + $0xb8] sm:$0xff]  ;;  %v474_v21 = vld [vmem:[#allocation6 + $0x1e8] sm:$0xff]  ;;  %v477_v22 = vld [vmem:[#allocation6 + $0x200] sm:$0xff]  ;;  %v2140_v25 = vpack.c.bf16 %v470_v17, %v467_v12 }
  0xb6   : > { %2121 = vmatpush1.bf16.msra.mxu0 %v2120_v32  ;;  %2205 = vmatpush3.bf16.msra.mxu1 %v2204_v5  ;;  %v487_v23 = vld [vmem:[#allocation6 + $0x250] sm:$0xff]  ;;  %v490_v24 = vld [vmem:[#allocation6 + $0x268] sm:$0xff]  ;;  %v473_v26 = vld [vmem:[#allocation6 + $0x1e0] sm:$0xff]  ;;  %v2212_v28 = vpack.c.bf16 %v436_v20, %v433_v19  ;;  %v2142_v29 = vpack.c.bf16 %v477_v22, %v474_v21  ;;  %v2911_v22 = vmov 0.0|0.0  }
  0xb7   : > { %2123 = vmatprep.subr.bf16.mxu0 %v2122_v33  ;;  %2207 = vmatprep.subr.bf16.mxu1 %v2206_v10  ;;  %v476_v27 = vld [vmem:[#allocation6 + $0x1f8] sm:$0xff]  ;;  %v2214_v31 = vpack.c.bf16 %v490_v24, %v487_v23  ;;  %v439_v32 = vld [vmem:[#allocation6 + $0xd0] sm:$0xff]  ;;  %v442_v33 = vld [vmem:[#allocation6 + $0xe8] sm:$0xff] }
  0xb8   : > { %v480_v30 = vld [vmem:[#allocation6 + $0x218] sm:$0xff]  ;;  %v483_v34 = vld [vmem:[#allocation6 + $0x230] sm:$0xff]  ;;  %v493_v35 = vld [vmem:[#allocation6 + $0x280] sm:$0xff]  ;;  %v2144_v37 = vpack.c.bf16 %v476_v27, %v473_v26  ;;  %v2216_v40 = vpack.c.bf16 %v442_v33, %v439_v32 }
  0xb9   : > { %v496_v36 = vld [vmem:[#allocation6 + $0x298] sm:$0xff]  ;;  %v2146_v41 = vpack.c.bf16 %v483_v34, %v480_v30  ;;  %v486_v43 = vld [vmem:[#allocation6 + $0x248] sm:$0xff]  ;;  %v445_v45 = vld [vmem:[#allocation6 + $0x100] sm:$0xff] }
  0xba   : > { %2125 = vmatpush1.bf16.msra.mxu0 %v2124_v38  ;;  %2209 = vmatpush3.bf16.msra.mxu1 %v2208_v13  ;;  %v479_v38 = vld [vmem:[#allocation6 + $0x210] sm:$0xff]  ;;  %v2218_v44 = vpack.c.bf16 %v496_v36, %v493_v35  ;;  %v489_v47 = vld [vmem:[#allocation6 + $0x260] sm:$0xff]  ;;  %v502_v49 = vld [vmem:[#allocation6 + $0x2c8] sm:$0xff]  ;;  %v2913_v36 = vmov 0.0  }
  0xbb   : > { %2127 = vmatprep.subr.bf16.mxu0 %v2126_v39  ;;  %2211 = vmatprep.subr.bf16.mxu1 %v2210_v18  ;;  %v482_v39 = vld [vmem:[#allocation6 + $0x228] sm:$0xff]  ;;  %v499_v48 = vld [vmem:[#allocation6 + $0x2b0] sm:$0xff]  ;;  %v485_v51 = vld [vmem:[#allocation6 + $0x240] sm:$0xff]  ;;  %v2150_v54 = vpack.c.bf16 %v489_v47, %v486_v43 }
  0xbc   : > { %v488_v52 = vld [vmem:[#allocation6 + $0x258] sm:$0xff]  ;;  %v2222_v56 = vpack.c.bf16 %v502_v49, %v499_v48  ;;  %v451_v57 = vld [vmem:[#allocation6 + $0x130] sm:$0xff]  ;;  %v454_v58 = vld [vmem:[#allocation6 + $0x148] sm:$0xff] }
  0xbd   : > { %v492_v55 = vld [vmem:[#allocation6 + $0x278] sm:$0xff]  ;;  %v495_v59 = vld [vmem:[#allocation6 + $0x290] sm:$0xff]  ;;  %v505_v60 = vld [vmem:[#allocation6 + $0x2e0] sm:$0xff]  ;;  %v2152_v62 = vpack.c.bf16 %v488_v52, %v485_v51  ;;  %v2224_v0 = vpack.c.bf16 %v454_v58, %v451_v57 }
  0xbe   : > { %2129 = vmatpush1.bf16.msra.mxu0 %v2128_v46  ;;  %2213 = vmatpush3.bf16.msra.mxu1 %v2212_v28  ;;  %v448_v46 = vld [vmem:[#allocation6 + $0x118] sm:$0xff]  ;;  %v491_v63 = vld [vmem:[#allocation6 + $0x270] sm:$0xff]  ;;  %v2154_v1 = vpack.c.bf16 %v495_v59, %v492_v55  ;;  %v457_v4 = vld [vmem:[#allocation6 + $0x160] sm:$0xff] }
  0xbf   : > { %2131 = vmatprep.subr.bf16.mxu0 %v2130_v50  ;;  %2215 = vmatprep.subr.bf16.mxu1 %v2214_v31  ;;  %v2148_v50 = vpack.c.bf16 %v482_v39, %v479_v38  ;;  %v2220_v53 = vpack.c.bf16 %v448_v46, %v445_v45  ;;  %v460_v5 = vld [vmem:[#allocation6 + $0x178] sm:$0xff]  ;;  %v498_v6 = vld [vmem:[#allocation6 + $0x2a8] sm:$0xff]  ;;  %v501_v7 = vld [vmem:[#allocation6 + $0x2c0] sm:$0xff] }
  0xc0   : > { %v497_v9 = vld [vmem:[#allocation6 + $0x2a0] sm:$0xff]  ;;  %v2228_v10 = vpack.c.bf16 %v460_v5, %v457_v4  ;;  %v500_v12 = vld [vmem:[#allocation6 + $0x2b8] sm:$0xff]  ;;  %v511_v13 = vld [vmem:[#allocation6 + $0x310] sm:$0xff] }
  0xc1   : > { %v514_v14 = vld [vmem:[#allocation6 + $0x328] sm:$0xff]  ;;  %v504_v15 = vld [vmem:[#allocation6 + $0x2d8] sm:$0xff]  ;;  %v2160_v17 = vpack.c.bf16 %v500_v12, %v497_v9  ;;  %v503_v18 = vld [vmem:[#allocation6 + $0x2d0] sm:$0xff] }
  0xc2   : > { %2133 = vmatpush1.bf16.msra.mxu0 %v2132_v61  ;;  %2217 = vmatpush3.bf16.msra.mxu1 %v2216_v40  ;;  %v508_v61 = vld [vmem:[#allocation6 + $0x2f8] sm:$0xff]  ;;  %v2231_v19 = vpack.c.bf16 %v514_v14, %v511_v13  ;;  %v506_v21 = vld [vmem:[#allocation6 + $0x2e8] sm:$0xff]  ;;  %v517_v23 = vld [vmem:[#allocation6 + $0x340] sm:$0xff] }
  0xc3   : > { %2135 = vmatprep.subr.bf16.mxu0 %v2134_v2  ;;  %2219 = vmatprep.subr.bf16.mxu1 %v2218_v44  ;;  %v494_v2 = vld [vmem:[#allocation6 + $0x288] sm:$0xff]  ;;  %v2226_v3 = vpack.c.bf16 %v508_v61, %v505_v60  ;;  %v520_v24 = vld [vmem:[#allocation6 + $0x358] sm:$0xff]  ;;  %v513_v26 = vld [vmem:[#allocation6 + $0x320] sm:$0xff]  ;;  %v2164_v27 = vpack.c.bf16 %v506_v21, %v503_v18 }
  0xc4   : > { %v2156_v8 = vpack.c.bf16 %v494_v2, %v491_v63  ;;  %v2234_v28 = vpack.c.bf16 %v520_v24, %v517_v23  ;;  %v509_v30 = vld [vmem:[#allocation6 + $0x300] sm:$0xff]  ;;  %v512_v31 = vld [vmem:[#allocation6 + $0x318] sm:$0xff]  ;;  %v519_v33 = vld [vmem:[#allocation6 + $0x350] sm:$0xff] }
  0xc5   : > { %v516_v32 = vld [vmem:[#allocation6 + $0x338] sm:$0xff]  ;;  %v523_v34 = vld [vmem:[#allocation6 + $0x370] sm:$0xff]  ;;  %v526_v35 = vld [vmem:[#allocation6 + $0x388] sm:$0xff] }
  0xc6   : > { %2137 = vmatpush1.bf16.msra.mxu0 %v2136_v11  ;;  %2221 = vmatpush3.bf16.msra.mxu1 %v2220_v53  ;;  %v2158_v11 = vpack.c.bf16 %v501_v7, %v498_v6  ;;  %v2170_v38 = vpack.c.bf16 %v519_v33, %v516_v32  ;;  %v515_v39 = vld [vmem:[#allocation6 + $0x330] sm:$0xff]  ;;  %v518_v40 = vld [vmem:[#allocation6 + $0x348] sm:$0xff]  ;;  %v2237_v43 = vpack.c.bf16 %v526_v35, %v523_v34  ;;  %v525_v44 = vld [vmem:[#allocation6 + $0x380] sm:$0xff] }
  0xc7   : > { %2139 = vmatprep.subr.bf16.mxu0 %v2138_v16  ;;  %2223 = vmatprep.subr.bf16.mxu1 %v2222_v56  ;;  %v507_v16 = vld [vmem:[#allocation6 + $0x2f0] sm:$0xff]  ;;  %v529_v45 = vld [vmem:[#allocation6 + $0x3a0] sm:$0xff]  ;;  %v532_v46 = vld [vmem:[#allocation6 + $0x3b8] sm:$0xff]  ;;  %v2172_v47 = vpack.c.bf16 %v518_v40, %v515_v39  ;;  %v411_v39 = vrot.slane %v3206_v42, 2 }
  0xc8   : > { %v2162_v20 = vpack.c.bf16 %v507_v16, %v504_v15  ;;  %v521_v49 = vld [vmem:[#allocation6 + $0x360] sm:$0xff]  ;;  %v528_v51 = vld [vmem:[#allocation6 + $0x398] sm:$0xff]  ;;  %v2240_v52 = vpack.c.bf16 %v532_v46, %v529_v45  ;;  %v531_v53 = vld [vmem:[#allocation6 + $0x3b0] sm:$0xff] }
  0xc9   : > { %v538_v55 = vld [vmem:[#allocation6 + $0x3e8] sm:$0xff]  ;;  %v2178_v57 = vpack.c.bf16 %v531_v53, %v528_v51  ;;  %v527_v58 = vld [vmem:[#allocation6 + $0x390] sm:$0xff]  ;;  %v541_v63 = vld [vmem:[#allocation6 + $0x400] sm:$0xff] }
  0xca   : > { %2141 = vmatpush1.bf16.msra.mxu0 %v2140_v25  ;;  %2225 = vmatpush3.bf16.msra.mxu1 %v2224_v0  ;;  %v510_v25 = vld [vmem:[#allocation6 + $0x308] sm:$0xff]  ;;  %v544_v0 = vld [vmem:[#allocation6 + $0x418] sm:$0xff]  ;;  %v543_v7 = vld [vmem:[#allocation6 + $0x410] sm:$0xff] }
  0xcb   : > { %2143 = vmatprep.subr.bf16.mxu0 %v2142_v29  ;;  %2227 = vmatprep.subr.bf16.mxu1 %v2226_v3  ;;  %v2166_v29 = vpack.c.bf16 %v513_v26, %v510_v25  ;;  %v530_v59 = vld [vmem:[#allocation6 + $0x3a8] sm:$0xff]  ;;  %v533_v3 = vld [vmem:[#allocation6 + $0x3c0] sm:$0xff]  ;;  %v536_v4 = vld [vmem:[#allocation6 + $0x3d8] sm:$0xff]  ;;  %v2246_v6 = vpack.c.bf16 %v544_v0, %v541_v63 }
  0xcc   : > { %v534_v60 = vld [vmem:[#allocation6 + $0x3c8] sm:$0xff]  ;;  %v540_v5 = vld [vmem:[#allocation6 + $0x3f8] sm:$0xff]  ;;  %v539_v12 = vld [vmem:[#allocation6 + $0x3f0] sm:$0xff] }
  0xcd   : > { %v550_v9 = vld [vmem:[#allocation6 + $0x448] sm:$0xff]  ;;  %v549_v16 = vld [vmem:[#allocation6 + $0x440] sm:$0xff]  ;;  %v556_v18 = vld [vmem:[#allocation6 + $0x478] sm:$0xff] }
  0xce   : > { %2145 = vmatpush1.bf16.msra.mxu0 %v2144_v37  ;;  %2229 = vmatpush3.bf16.msra.mxu1 %v2228_v10  ;;  %v2168_v37 = vpack.c.bf16 %v512_v31, %v509_v30  ;;  %v2184_v10 = vpack.c.bf16 %v536_v4, %v533_v3  ;;  %v542_v13 = vld [vmem:[#allocation6 + $0x408] sm:$0xff]  ;;  %v545_v24 = vld [vmem:[#allocation6 + $0x420] sm:$0xff]  ;;  %v548_v25 = vld [vmem:[#allocation6 + $0x438] sm:$0xff] }
  0xcf   : > { %2147 = vmatprep.subr.bf16.mxu0 %v2146_v41  ;;  %2230 = vmatprep.subr.bf16.mxu1 %v2911_v22  ;;  %v522_v41 = vld [vmem:[#allocation6 + $0x368] sm:$0xff]  ;;  %v2188_v21 = vpack.c.bf16 %v542_v13, %v539_v12  ;;  %v552_v26 = vld [vmem:[#allocation6 + $0x458] sm:$0xff]  ;;  %v874_v30 = vld [vmem:[#allocation8] sm:$0xff]  ;;  %v2192_v34 = vpack.c.bf16 %v548_v25, %v545_v24 }
  0xd0   : > { %v2174_v48 = vpack.c.bf16 %v525_v44, %v522_v41  ;;  %v546_v14 = vld [vmem:[#allocation6 + $0x428] sm:$0xff]  ;;  %v876_v31 = vld [vmem:[#allocation8 + $0x10] sm:$0xff]  ;;  %v881_v33 = vld [vmem:[#allocation8 + $0x38] sm:$0xff] }
  0xd1   : > { %781 = vmatmul.mubr.f32.vlgmr.msra.gmra.mrb[0].mxu1 %v3206_v42  ;;  %v2190_v23 = vpack.c.bf16 %v549_v16, %v546_v14  ;;  %v879_v32 = vld [vmem:[#allocation8 + $0x28] sm:$0xff]  ;;  %v878_v41 = vld [vmem:[#allocation8 + $0x20] sm:$0xff]  ;;  %v885_v44 = vld [vmem:[#allocation8 + $0x58] sm:$0xff] }
  0xd2   : > { %2149 = vmatpush1.bf16.msra.mxu0 %v2148_v50  ;;  %2232 = vmatpush3.bf16.msra.mxu1 %v2231_v19  ;;  %v524_v50 = vld [vmem:[#allocation6 + $0x378] sm:$0xff]  ;;  %v875_v19 = vld [vmem:[#allocation8 + $0x8] sm:$0xff]  ;;  %v2258_v40 = vpack.c.bf16 %v881_v33, %v879_v32  ;;  %v886_v53 = vld [vmem:[#allocation8 + $0x60] sm:$0xff] }
  0xd3   : > { %2151 = vmatprep.subr.bf16.mxu0 %v2150_v54  ;;  %2233 = vmatprep.subr.bf16.mxu1 %v2911_v22  ;;  %v535_v54 = vld [vmem:[#allocation6 + $0x3d0] sm:$0xff]  ;;  %v2176_v56 = vpack.c.bf16 %v524_v50, %v521_v49  ;;  %v887_v50 = vld [vmem:[#allocation8 + $0x68] sm:$0xff]  ;;  %v889_v51 = vld [vmem:[#allocation8 + $0x78] sm:$0xff] }
  0xd4   : > { %2099 = vmatprep.mubr.msk.f32.mxu1 %vm2912_vm0, %v2913_v36  ;;  %v2243_v61 = vpack.c.bf16 %v538_v55, %v535_v54  ;;  %v884_v49 = vld [vmem:[#allocation8 + $0x50] sm:$0xff]  ;;  %v891_v55 = vld [vmem:[#allocation8 + $0x88] sm:$0xff]  ;;  %v901_v4 = vld [vmem:[#allocation8 + $0xd8] sm:$0xff] }
  0xd5   : > { %v888_v54 = vld [vmem:[#allocation8 + $0x70] sm:$0xff]  ;;  %v899_v3 = vld [vmem:[#allocation8 + $0xc8] sm:$0xff]  ;;  %v902_v13 = vld [vmem:[#allocation8 + $0xe0] sm:$0xff] }
  0xd6   : > { %2153 = vmatpush1.bf16.msra.mxu0 %v2152_v62  ;;  %2235 = vmatpush3.bf16.msra.mxu1 %v2234_v28  ;;  %v537_v62 = vld [vmem:[#allocation6 + $0x3e0] sm:$0xff]  ;;  %v555_v28 = vld [vmem:[#allocation6 + $0x470] sm:$0xff]  ;;  %v909_v16 = vld [vmem:[#allocation8 + $0x118] sm:$0xff] }
  0xd7   : > { %2155 = vmatprep.subr.bf16.mxu0 %v2154_v1  ;;  %2236 = vmatprep.subr.bf16.mxu1 %v2911_v22  ;;  %v2180_v1 = vpack.c.bf16 %v530_v59, %v527_v58  ;;  %v2182_v2 = vpack.c.bf16 %v537_v62, %v534_v60  ;;  %v2194_v35 = vpack.c.bf16 %v555_v28, %v552_v26  ;;  %v890_v59 = vld [vmem:[#allocation8 + $0x80] sm:$0xff]  ;;  %v892_v60 = vld [vmem:[#allocation8 + $0x90] sm:$0xff]  ;;  %v897_v62 = vld [vmem:[#allocation8 + $0xb8] sm:$0xff] }
  0xd8   : > { %v2272_v63 = vpack.c.bf16 %v892_v60, %v890_v59  ;;  %v904_v14 = vld [vmem:[#allocation8 + $0xf0] sm:$0xff]  ;;  %v910_v26 = vld [vmem:[#allocation8 + $0x120] sm:$0xff]  ;;  %v915_v28 = vld [vmem:[#allocation8 + $0x148] sm:$0xff] }
  0xd9   : > { %v914_v32 = vld [vmem:[#allocation8 + $0x140] sm:$0xff]  ;;  %v916_v33 = vld [vmem:[#allocation8 + $0x150] sm:$0xff]  ;;  %v937_v59 = vld [vmem:[#allocation8 + $0x1f8] sm:$0xff] }
  0xda   : > { %2157 = vmatpush1.bf16.msra.mxu0 %v2156_v8  ;;  %2238 = vmatpush3.bf16.msra.mxu1 %v2237_v43  ;;  %v547_v8 = vld [vmem:[#allocation6 + $0x430] sm:$0xff] }
  0xdb   : > { %2159 = vmatprep.subr.bf16.mxu0 %v2158_v11  ;;  %2239 = vmatprep.subr.bf16.mxu1 %v2911_v22  ;;  %v2186_v11 = vpack.c.bf16 %v543_v7, %v540_v5  ;;  %v2249_v15 = vpack.c.bf16 %v550_v9, %v547_v8  ;;  %v880_v43 = vld [vmem:[#allocation8 + $0x30] sm:$0xff]  ;;  %v898_v7 = vld [vmem:[#allocation8 + $0xc0] sm:$0xff]  ;;  %v903_v9 = vld [vmem:[#allocation8 + $0xe8] sm:$0xff] }
  0xdc   : > { %v2260_v46 = vpack.c.bf16 %v880_v43, %v878_v41  ;;  %v900_v8 = vld [vmem:[#allocation8 + $0xd0] sm:$0xff]  ;;  %v925_v41 = vld [vmem:[#allocation8 + $0x198] sm:$0xff] }
  0xde   : > { %2161 = vmatpush1.bf16.msra.mxu0 %v2160_v17  ;;  %2241 = vmatpush3.bf16.msra.mxu1 %v2240_v52  ;;  %v553_v17 = vld [vmem:[#allocation6 + $0x460] sm:$0xff]  ;;  %v2266_v52 = vpack.c.bf16 %v889_v51, %v887_v50  ;;  %v928_v51 = vld [vmem:[#allocation8 + $0x1b0] sm:$0xff] }
  0xdf   : > { %2163 = vmatprep.subr.bf16.mxu0 %v2162_v20  ;;  %2242 = vmatprep.subr.bf16.mxu1 %v2911_v22  ;;  %v877_v20 = vld [vmem:[#allocation8 + $0x18] sm:$0xff]  ;;  %v926_v50 = vld [vmem:[#allocation8 + $0x1a0] sm:$0xff] }
  0xe2   : > { %2165 = vmatpush1.bf16.msra.mxu0 %v2164_v27  ;;  %2244 = vmatpush3.bf16.msra.mxu1 %v2243_v61  ;;  %v2252_v27 = vpack.c.bf16 %v556_v18, %v553_v17  ;;  %v895_v61 = vld [vmem:[#allocation8 + $0xa8] sm:$0xff]  ;;  %v2284_v17 = vpack.c.bf16 %v904_v14, %v902_v13 }
  0xe3   : > { %2167 = vmatprep.subr.bf16.mxu0 %v2166_v29  ;;  %2245 = vmatprep.subr.bf16.mxu1 %v2911_v22  ;;  %v2254_v29 = vpack.c.bf16 %v877_v20, %v875_v19  ;;  %v2274_v0 = vpack.c.bf16 %v897_v62, %v895_v61  ;;  %v906_v19 = vld [vmem:[#allocation8 + $0x100] sm:$0xff]  ;;  %v908_v20 = vld [vmem:[#allocation8 + $0x110] sm:$0xff] }
  0xe4   : > { %v2288_v24 = vpack.c.bf16 %v908_v20, %v906_v19  ;;  %v934_v61 = vld [vmem:[#allocation8 + $0x1e0] sm:$0xff]  ;;  %v936_v62 = vld [vmem:[#allocation8 + $0x1f0] sm:$0xff] }
  0xe5   : > { %639 = vmatmul.mubr.f32.vlgmr.msra.gmra.mrb[0].mxu0 %v3206_v42 }
  0xe6   : > { %2169 = vmatpush1.bf16.msra.mxu0 %v2168_v37  ;;  %709 = vmatprep.mubr.f32.mxu0 %v2913_v36  ;;  %v551_v36 = vld [vmem:[#allocation6 + $0x450] sm:$0xff]  ;;  %v554_v37 = vld [vmem:[#allocation6 + $0x468] sm:$0xff] }
  0xe7   : > { %2171 = vmatprep.subr.bf16.mxu0 %v2170_v38  ;;  %2247 = vmatpush3.bf16.msra.mxu1 %v2246_v6  ;;  %v2256_v38 = vpack.c.bf16 %v876_v31, %v874_v30  ;;  %v2196_v45 = vpack.c.bf16 %v554_v37, %v551_v36  ;;  %v2278_v6 = vpack.c.bf16 %v901_v4, %v899_v3 }
  0xe8   : > { %2248 = vmatprep.subr.bf16.mxu1 %v2911_v22  ;;  %v2296_v36 = vpack.c.bf16 %v916_v33, %v914_v32 }
  0xea   : > { %2173 = vmatpush1.bf16.msra.mxu0 %v2172_v47 }
  0xeb   : > { %2175 = vmatprep.subr.bf16.mxu0 %v2174_v48  ;;  %2250 = vmatpush3.bf16.msra.mxu1 %v2249_v15  ;;  %v882_v48 = vld [vmem:[#allocation8 + $0x40] sm:$0xff]  ;;  %v907_v15 = vld [vmem:[#allocation8 + $0x108] sm:$0xff] }
  0xec   : > { %2251 = vmatprep.subr.bf16.mxu1 %v2911_v22  ;;  %v883_v22 = vld [vmem:[#allocation8 + $0x48] sm:$0xff]  ;;  %v2264_v42 = vpack.c.bf16 %v884_v49, %v882_v48  ;;  %v2286_v18 = vpack.c.bf16 %v909_v16, %v907_v15 }
  0xed   : > { %v2262_v47 = vpack.c.bf16 %v885_v44, %v883_v22  ;;  %v922_v44 = vld [vmem:[#allocation8 + $0x180] sm:$0xff] }
  0xee   : > { %2177 = vmatpush1.bf16.msra.mxu0 %v2176_v56  ;;  %v893_v56 = vld [vmem:[#allocation8 + $0x98] sm:$0xff] }
  0xef   : > { %2179 = vmatprep.subr.bf16.mxu0 %v2178_v57  ;;  %2253 = vmatpush3.bf16.msra.mxu1 %v2252_v27  ;;  %v2268_v57 = vpack.c.bf16 %v888_v54, %v886_v53  ;;  %v2270_v58 = vpack.c.bf16 %v893_v56, %v891_v55  ;;  %v912_v27 = vld [vmem:[#allocation8 + $0x130] sm:$0xff]  ;;  %v2308_v53 = vpack.c.bf16 %v928_v51, %v926_v50  ;;  %v930_v55 = vld [vmem:[#allocation8 + $0x1c0] sm:$0xff] }
  0xf0   : > { %2255 = vmatprep.subr.bf16.mxu1 %v2254_v29  ;;  %v917_v29 = vld [vmem:[#allocation8 + $0x158] sm:$0xff]  ;;  %v2292_v30 = vpack.c.bf16 %v912_v27, %v910_v26  ;;  %v932_v56 = vld [vmem:[#allocation8 + $0x1d0] sm:$0xff]  ;;  %v943_v27 = vld [vmem:[#allocation8 + $0x228] sm:$0xff] }
  0xf1   : > { %v2294_v31 = vpack.c.bf16 %v917_v29, %v915_v28  ;;  %v945_v28 = vld [vmem:[#allocation8 + $0x238] sm:$0xff] }
  0xf2   : > { %2181 = vmatpush1.bf16.msra.mxu0 %v2180_v1  ;;  %2100 = vmatmul.mubr.f32.vlgmr.msra.gmra.mrb[2].mxu1 %v411_v39  ;;  %v894_v1 = vld [vmem:[#allocation8 + $0xa0] sm:$0xff] }
  0xf3   : > { %2183 = vmatprep.subr.bf16.mxu0 %v2182_v2  ;;  %2257 = vmatpush1.bf16.msra.mxu1 %v2256_v38  ;;  %v896_v2 = vld [vmem:[#allocation8 + $0xb0] sm:$0xff]  ;;  %v918_v38 = vld [vmem:[#allocation8 + $0x160] sm:$0xff] }
  0xf4   : > { %2259 = vmatprep.subr.bf16.mxu1 %v2258_v40  ;;  %v2276_v5 = vpack.c.bf16 %v896_v2, %v894_v1  ;;  %v923_v40 = vld [vmem:[#allocation8 + $0x188] sm:$0xff]  ;;  %v941_v1 = vld [vmem:[#allocation8 + $0x218] sm:$0xff] }
  0xf5   : > { %v2302_v22 = vpack.c.bf16 %v925_v41, %v923_v40  ;;  %v948_v40 = vld [vmem:[#allocation8 + $0x250] sm:$0xff]  ;;  %v1319_v41 = vld [vmem:[#allocation9 + $0x80] sm:$0xff] }
  0xf6   : > { %2185 = vmatpush1.bf16.msra.mxu0 %v2184_v10  ;;  %v905_v10 = vld [vmem:[#allocation8 + $0xf8] sm:$0xff] }
  0xf7   : > { %2187 = vmatprep.subr.bf16.mxu0 %v2186_v11  ;;  %2261 = vmatpush1.bf16.msra.mxu1 %v2260_v46  ;;  %v2280_v11 = vpack.c.bf16 %v900_v8, %v898_v7  ;;  %v2282_v12 = vpack.c.bf16 %v905_v10, %v903_v9  ;;  %v927_v46 = vld [vmem:[#allocation8 + $0x1a8] sm:$0xff] }
  0xf8   : > { %2263 = vmatprep.subr.bf16.mxu1 %v2262_v47  ;;  %v929_v47 = vld [vmem:[#allocation8 + $0x1b8] sm:$0xff]  ;;  %v557_v9 = vld [vmem:[%s3309_s2] sm:$0x7] }
  0xf9   : > { %v2306_v49 = vpack.c.bf16 %v929_v47, %v927_v46  ;;  %v1304_v46 = vld [vmem:[#allocation9 + $0x8] sm:$0xff]  ;;  %v1321_v47 = vld [vmem:[#allocation9 + $0x90] sm:$0xff] }
  0xfa   : > { %2189 = vmatpush1.bf16.msra.mxu0 %v2188_v21  ;;  %v911_v21 = vld [vmem:[#allocation8 + $0x128] sm:$0xff] }
  0xfb   : > { %2191 = vmatprep.subr.bf16.mxu0 %v2190_v23  ;;  %2265 = vmatpush1.bf16.msra.mxu1 %v2264_v42  ;;  %v913_v23 = vld [vmem:[#allocation8 + $0x138] sm:$0xff]  ;;  %v931_v42 = vld [vmem:[#allocation8 + $0x1c8] sm:$0xff] }
  0xfc   : > { %2267 = vmatprep.subr.bf16.mxu1 %v2266_v52  ;;  %v2290_v25 = vpack.c.bf16 %v913_v23, %v911_v21  ;;  %v933_v52 = vld [vmem:[#allocation8 + $0x1d8] sm:$0xff] }
  0xfd   : > { %v2310_v54 = vpack.c.bf16 %v933_v52, %v931_v42  ;;  %v1305_v42 = vld [vmem:[#allocation9 + $0x10] sm:$0xff]  ;;  %v1306_v52 = vld [vmem:[#allocation9 + $0x18] sm:$0xff] }
  0xfe   : > { %2193 = vmatpush1.bf16.msra.mxu0 %v2192_v34  ;;  %v919_v34 = vld [vmem:[#allocation8 + $0x168] sm:$0xff] }
  0xff   : > { %2195 = vmatprep.subr.bf16.mxu0 %v2194_v35  ;;  %2269 = vmatpush1.bf16.msra.mxu1 %v2268_v57  ;;  %v921_v35 = vld [vmem:[#allocation8 + $0x178] sm:$0xff]  ;;  %v2312_v57 = vpack.c.bf16 %v932_v56, %v930_v55  ;;  %v1324_v56 = vld [vmem:[#allocation9 + $0xa8] sm:$0xff] }
 0x100   : > { %2271 = vmatprep.subr.bf16.mxu1 %v2270_v58  ;;  %v2298_v37 = vpack.c.bf16 %v921_v35, %v919_v34  ;;  %v935_v58 = vld [vmem:[#allocation8 + $0x1e8] sm:$0xff]  ;;  %v2322_v34 = vpack.c.bf16 %v945_v28, %v943_v27  ;;  %v942_v35 = vld [vmem:[#allocation8 + $0x220] sm:$0xff]  ;;  %v953_v55 = vld [vmem:[#allocation8 + $0x278] sm:$0xff] }
 0x101   : > { %v2314_v60 = vpack.c.bf16 %v937_v59, %v935_v58  ;;  %v950_v59 = vld [vmem:[#allocation8 + $0x260] sm:$0xff]  ;;  %v1312_v27 = vld [vmem:[#allocation9 + $0x48] sm:$0xff] }
 0x102   : > { %2197 = vmatpush1.bf16.msra.mxu0 %v2196_v45  ;;  %v924_v45 = vld [vmem:[#allocation8 + $0x190] sm:$0xff] }
 0x103   : > { %2273 = vmatpush1.bf16.msra.mxu1 %v2272_v63  ;;  %v2304_v48 = vpack.c.bf16 %v924_v45, %v922_v44  ;;  %v2316_v63 = vpack.c.bf16 %v936_v62, %v934_v61  ;;  %v1307_v61 = vld [vmem:[#allocation9 + $0x20] sm:$0xff]  ;;  %v1308_v62 = vld [vmem:[#allocation9 + $0x28] sm:$0xff] }
 0x104   : > { %2275 = vmatprep.subr.bf16.mxu1 %v2274_v0  ;;  %v939_v0 = vld [vmem:[#allocation8 + $0x208] sm:$0xff] }
 0x105   : > { %710 = vmatmul.mubr.f32.vlgmr.msra.gmra.mrb[0].mxu0 %v411_v39  ;;  %v920_v39 = vld [vmem:[#allocation8 + $0x170] sm:$0xff]  ;;  %v2318_v2 = vpack.c.bf16 %v941_v1, %v939_v0 }
 0x106   : > { %v2300_v43 = vpack.c.bf16 %v920_v39, %v918_v38  ;;  %v949_v38 = vld [vmem:[#allocation8 + $0x258] sm:$0xff]  ;;  %v946_v39 = vld [vmem:[#allocation8 + $0x240] sm:$0xff]  ;;  %v952_v0 = vld [vmem:[#allocation8 + $0x270] sm:$0xff] }
 0x107   : > { %2277 = vmatpush1.bf16.msra.mxu1 %v2276_v5  ;;  %v2328_v58 = vpack.c.bf16 %v948_v40, %v946_v39  ;;  %v1325_v1 = vld [vmem:[#allocation9 + $0xb0] sm:$0xff]  ;;  %v1314_v40 = vld [vmem:[#allocation9 + $0x58] sm:$0xff] }
 0x108   : > { %2279 = vmatprep.subr.bf16.mxu1 %v2278_v6  ;;  %v559_v6 = vlaneseq  ;;  %v1313_v39 = vld [vmem:[#allocation9 + $0x50] sm:$0xff] }
 0x10a   : > { %v3220_v7 = vshrl.u32 %v559_v6, 7  ;;  %v2332_v6 = vpack.c.bf16 %v952_v0, %v950_v59  ;;  %v977_v59 = vld [vmem:[#allocation8 + $0x338] sm:$0xff]  ;;  %v979_v0 = vld [vmem:[#allocation8 + $0x348] sm:$0xff] }
 0x10b   : > { %2281 = vmatpush1.bf16.msra.mxu1 %v2280_v11 }
 0x10c   : > { %2283 = vmatprep.subr.bf16.mxu1 %v2282_v12  ;;  %v569_v8 = vsub.s32 2, %v3220_v7  ;;  %v3227_v12 = vsub.s32 0, %v3220_v7  ;;  %v565_v14 = vsub.s32 1, %v3220_v7 }
 0x10e   : > { %v570_v10 = vrot.slane %v557_v9, %v569_v8  ;;  %v954_v8 = vld [vmem:[#allocation8 + $0x280] sm:$0xff] }
 0x10f   : > { %2285 = vmatpush1.bf16.msra.mxu1 %v2284_v17  ;;  %v562_v17 = vrot.slane %v557_v9, %v3227_v12 }
 0x110   : > { %2287 = vmatprep.subr.bf16.mxu1 %v2286_v18  ;;  %v566_v18 = vrot.slane %v557_v9, %v565_v14 }
 0x113   : > { %2289 = vmatpush1.bf16.msra.mxu1 %v2288_v24  ;;  %v938_v24 = vld [vmem:[#allocation8 + $0x200] sm:$0xff] }
 0x114   : > { %2291 = vmatprep.subr.bf16.mxu1 %v2290_v25  ;;  %v940_v25 = vld [vmem:[#allocation8 + $0x210] sm:$0xff] }
 0x117   : > { %2293 = vmatpush1.bf16.msra.mxu1 %v2292_v30 }
 0x118   : > { %2295 = vmatprep.subr.bf16.mxu1 %v2294_v31  ;;  %v2320_v31 = vpack.c.bf16 %v940_v25, %v938_v24  ;;  %v958_v24 = vld [vmem:[#allocation8 + $0x2a0] sm:$0xff] }
 0x11b   : > { %2297 = vmatpush1.bf16.msra.mxu1 %v2296_v36  ;;  %v944_v36 = vld [vmem:[#allocation8 + $0x230] sm:$0xff] }
 0x11c   : > { %2299 = vmatprep.subr.bf16.mxu1 %v2298_v37  ;;  %v947_v37 = vld [vmem:[#allocation8 + $0x248] sm:$0xff]  ;;  %v2324_v44 = vpack.c.bf16 %v944_v36, %v942_v35 }
 0x11f   : > { %2301 = vmatpush1.bf16.msra.mxu1 %v2300_v43  ;;  %v1320_v43 = vld [vmem:[#allocation9 + $0x88] sm:$0xff] }
 0x120   : > { %2303 = vmatprep.subr.bf16.mxu1 %v2302_v22  ;;  %v1303_v22 = vld [vmem:[#allocation9] sm:$0xff]  ;;  %v2446_v45 = vpack.c.bf16 %v1320_v43, %v1319_v41  ;;  %v964_v43 = vld [vmem:[#allocation8 + $0x2d0] sm:$0xff] }
 0x121   : > { %v2448_v50 = vpack.c.bf16 %v1304_v46, %v1303_v22  ;;  %v1331_v22 = vld [vmem:[#allocation9 + $0xe0] sm:$0xff]  ;;  %v969_v46 = vld [vmem:[#allocation8 + $0x2f8] sm:$0xff] }
 0x122   : > { %2447 = vmatprep.subr.bf16.mxu0 %v2446_v45  ;;  %v967_v45 = vld [vmem:[#allocation8 + $0x2e8] sm:$0xff] }
 0x123   : > { %2305 = vmatpush1.bf16.msra.mxu1 %v2304_v48  ;;  %v1322_v48 = vld [vmem:[#allocation9 + $0x98] sm:$0xff]  ;;  %2449 = vmatpush3.bf16.msra.mxu0 %v2448_v50  ;;  %v2346_v50 = vpack.c.bf16 %v969_v46, %v967_v45 }
 0x124   : > { %2307 = vmatprep.subr.bf16.mxu1 %v2306_v49  ;;  %v2326_v49 = vpack.c.bf16 %v949_v38, %v947_v37  ;;  %v2450_v51 = vpack.c.bf16 %v1322_v48, %v1321_v47  ;;  %v962_v37 = vld [vmem:[#allocation8 + $0x2c0] sm:$0xff]  ;;  %v2468_v47 = vpack.c.bf16 %v1314_v40, %v1313_v39 }
 0x125   : > { %v2344_v48 = vpack.c.bf16 %v964_v43, %v962_v37  ;;  %v1001_v37 = vld [vmem:[#allocation8 + $0x3f8] sm:$0xff]  ;;  %v998_v40 = vld [vmem:[#allocation8 + $0x3e0] sm:$0xff]  ;;  %v1003_v43 = vld [vmem:[#allocation8 + $0x408] sm:$0xff] }
 0x126   : > { %2451 = vmatprep.subr.bf16.mxu0 %v2450_v51  ;;  %v966_v51 = vld [vmem:[#allocation8 + $0x2e0] sm:$0xff] }
 0x127   : > { %2309 = vmatpush1.bf16.msra.mxu1 %v2308_v53  ;;  %v1323_v53 = vld [vmem:[#allocation9 + $0xa0] sm:$0xff] }
 0x128   : > { %2311 = vmatprep.subr.bf16.mxu1 %v2310_v54  ;;  %v951_v54 = vld [vmem:[#allocation8 + $0x268] sm:$0xff] }
 0x12b   : > { %2313 = vmatpush1.bf16.msra.mxu1 %v2312_v57  ;;  %v2452_v57 = vpack.c.bf16 %v1306_v52, %v1305_v42  ;;  %v968_v42 = vld [vmem:[#allocation8 + $0x2f0] sm:$0xff]  ;;  %v971_v52 = vld [vmem:[#allocation8 + $0x308] sm:$0xff] }
 0x12c   : > { %2315 = vmatprep.subr.bf16.mxu1 %v2314_v60  ;;  %v2454_v60 = vpack.c.bf16 %v1324_v56, %v1323_v53  ;;  %v973_v53 = vld [vmem:[#allocation8 + $0x318] sm:$0xff]  ;;  %v970_v56 = vld [vmem:[#allocation8 + $0x300] sm:$0xff] }
 0x12d   : > { %2453 = vmatpush3.bf16.msra.mxu0 %v2452_v57  ;;  %v972_v57 = vld [vmem:[#allocation8 + $0x310] sm:$0xff] }
 0x12e   : > { %2455 = vmatprep.subr.bf16.mxu0 %v2454_v60  ;;  %v2352_v60 = vpack.c.bf16 %v972_v57, %v970_v56  ;;  %v1011_v56 = vld [vmem:[#allocation8 + $0x448] sm:$0xff]  ;;  %v1013_v57 = vld [vmem:[#allocation8 + $0x458] sm:$0xff] }
 0x12f   : > { %2317 = vmatpush1.bf16.msra.mxu1 %v2316_v63  ;;  %v2330_v63 = vpack.c.bf16 %v953_v55, %v951_v54  ;;  %v2348_v54 = vpack.c.bf16 %v968_v42, %v966_v51  ;;  %v2350_v55 = vpack.c.bf16 %v973_v53, %v971_v52  ;;  %v1006_v53 = vld [vmem:[#allocation8 + $0x420] sm:$0xff] }
 0x130   : > { %2319 = vmatprep.subr.bf16.mxu1 %v2318_v2  ;;  %v1326_v2 = vld [vmem:[#allocation9 + $0xb8] sm:$0xff] }
 0x131   : > { %v2458_v9 = vpack.c.bf16 %v1326_v2, %v1325_v1  ;;  %v981_v1 = vld [vmem:[#allocation8 + $0x358] sm:$0xff] }
 0x1a4   : > { %v1907_v3 = vpop.f32.mrb[0].mxu1 }
 0x1a5   : > { %v1908_v4 = vpop.f32.mrb[1].mxu1 }
 0x1a6   : > { %v1909_v5 = vadd.f32 %v1908_v4, %v1907_v3  ;;  %v955_v3 = vld [vmem:[#allocation8 + $0x288] sm:$0xff]  ;;  %v957_v4 = vld [vmem:[#allocation8 + $0x298] sm:$0xff] }
 0x1a8   : > { %v783_v11 = vadd.f32 %v1909_v5, %v570_v10  ;;  %v2456_v5 = vpack.c.bf16 %v1308_v62, %v1307_v61  ;;  %v1309_v10 = vld [vmem:[#allocation9 + $0x30] sm:$0xff]  ;;  %v974_v62 = vld [vmem:[#allocation8 + $0x320] sm:$0xff] }
 0x1aa   : > { %2457 = vmatpush3.bf16.msra.mxu0 %v2456_v5  ;;  %v980_v5 = vld [vmem:[#allocation8 + $0x350] sm:$0xff] }
 0x1ab   : > { %2459 = vmatprep.subr.bf16.mxu0 %v2458_v9 }
 0x1c5   : > { %v852_v13 = vpop.f32.mrb[2].mxu1 }
 0x1c6   : > { %v3230_v15 = vadd.f32 %v852_v13, %v783_v11  ;;  %v2101_v16 = vpop.f32.mrb[3].mxu1  ;;  %v1310_v11 = vld [vmem:[#allocation9 + $0x38] sm:$0xff]  ;;  %v2334_v13 = vpack.c.bf16 %v957_v4, %v955_v3  ;;  %v2358_v3 = vpack.c.bf16 %v981_v1, %v979_v0  ;;  %v978_v4 = vld [vmem:[#allocation8 + $0x340] sm:$0xff] }
 0x1c7   : > { %v956_v16 = vld [vmem:[#allocation8 + $0x290] sm:$0xff]  ;;  %v2360_v9 = vpack.c.bf16 %v980_v5, %v978_v4  ;;  %v1014_v1 = vld [vmem:[#allocation8 + $0x460] sm:$0xff]  ;;  %v1021_v4 = vld [vmem:[#allocation8 + $0x498] sm:$0xff] }
 0x1c8   : > { %vm858_vm3 = vcmp.ge.f32.partialorder %v3230_v15, 0.0 }
 0x1d8   : > { %v711_v19 = vpop.f32.mrb[0].mxu0 }
 0x1d9   : > { %v2574_v20 = vadd.f32 %v711_v19, %v562_v17  ;;  %v713_v21 = vpop.f32.mrb[1].mxu0  ;;  %v1327_v17 = vld [vmem:[#allocation9 + $0xc0] sm:$0xff]  ;;  %v959_v19 = vld [vmem:[#allocation8 + $0x2a8] sm:$0xff] }
 0x1da   : > { %v2575_v23 = vadd.f32 %v713_v21, %v566_v18  ;;  %v1328_v18 = vld [vmem:[#allocation9 + $0xc8] sm:$0xff]  ;;  %v2460_v21 = vpack.c.bf16 %v1310_v11, %v1309_v10  ;;  %v982_v11 = vld [vmem:[#allocation8 + $0x360] sm:$0xff] }
 0x1db   : > { %vm856_vm1 = vcmp.ge.f32.partialorder %v2574_v20, 0.0  ;;  %v859_v26 = vmul.f32 0.01, %v2574_v20  ;;  %v2462_v25 = vpack.c.bf16 %v1328_v18, %v1327_v17  ;;  %v989_v17 = vld [vmem:[#allocation8 + $0x398] sm:$0xff] }
 0x1dc   : > { %v860_v29 = vmul.f32 0.01, %v2575_v23  ;;  %vm857_vm2 = vcmp.ge.f32.partialorder %v2575_v23, 0.0  ;;  %2461 = vmatpush3.bf16.msra.mxu0 %v2460_v21  ;;  %v988_v21 = vld [vmem:[#allocation8 + $0x390] sm:$0xff] }
 0x1dd   : > { %v862_v30 = vsel %vm856_vm1, %v2574_v20, %v859_v26  ;;  %v961_v20 = vld [vmem:[#allocation8 + $0x2b8] sm:$0xff]  ;;  %v1311_v26 = vld [vmem:[#allocation9 + $0x40] sm:$0xff]  ;;  %2463 = vmatprep.subr.bf16.mxu0 %v2462_v25 }
 0x1de   : > { %v3235_v32 = vsel %vm857_vm2, %v2575_v23, %v860_v29  ;;  %v868_v33 = vrot.slane %v862_v30, 1  ;;  %v2336_v23 = vpack.c.bf16 %v956_v16, %v954_v8  ;;  %v2338_v28 = vpack.c.bf16 %v961_v20, %v959_v19  ;;  %v960_v29 = vld [vmem:[#allocation8 + $0x2b0] sm:$0xff]  ;;  %v985_v8 = vld [vmem:[#allocation8 + $0x378] sm:$0xff]  ;;  %v987_v16 = vld [vmem:[#allocation8 + $0x388] sm:$0xff] }
 0x1df   : > { %1142 = vmatprep.mubr.f32.mxu1 %v3235_v32  ;;  %v2464_v35 = vpack.c.bf16 %v1312_v27, %v1311_v26  ;;  %v2340_v36 = vpack.c.bf16 %v960_v29, %v958_v24  ;;  %v2366_v19 = vpack.c.bf16 %v989_v17, %v987_v16  ;;  %v986_v20 = vld [vmem:[#allocation8 + $0x380] sm:$0xff]  ;;  %v993_v24 = vld [vmem:[#allocation8 + $0x3b8] sm:$0xff]  ;;  %v995_v29 = vld [vmem:[#allocation8 + $0x3c8] sm:$0xff] }
 0x1e0   : > { %1143 = vmatmul.mubr.f32.vlgmr.msra.gmra.mrb[4].mxu1 %v862_v30  ;;  %v1329_v30 = vld [vmem:[#allocation9 + $0xd0] sm:$0xff]  ;;  %v2368_v25 = vpack.c.bf16 %v988_v21, %v986_v20  ;;  %v990_v27 = vld [vmem:[#allocation8 + $0x3a0] sm:$0xff]  ;;  %v1029_v20 = vld [vmem:[#allocation8 + $0x4d8] sm:$0xff] }
 0x1e1   : > { %2321 = vmatpush1.bf16.msra.mxu1 %v2320_v31  ;;  %1213 = vmatprep.mubr.f32.mxu1 %v868_v33  ;;  %v1330_v31 = vld [vmem:[#allocation9 + $0xd8] sm:$0xff]  ;;  %v963_v33 = vld [vmem:[#allocation8 + $0x2c8] sm:$0xff]  ;;  %v1022_v17 = vld [vmem:[#allocation8 + $0x4a0] sm:$0xff] }
 0x1e2   : > { %2323 = vmatprep.subr.bf16.mxu1 %v2322_v34  ;;  %v965_v34 = vld [vmem:[#allocation8 + $0x2d8] sm:$0xff]  ;;  %v2466_v38 = vpack.c.bf16 %v1330_v31, %v1329_v30  ;;  %2465 = vmatpush3.bf16.msra.mxu0 %v2464_v35  ;;  %v996_v35 = vld [vmem:[#allocation8 + $0x3d0] sm:$0xff] }
 0x1e3   : > { %v2342_v41 = vpack.c.bf16 %v965_v34, %v963_v33  ;;  %v997_v30 = vld [vmem:[#allocation8 + $0x3d8] sm:$0xff]  ;;  %v994_v34 = vld [vmem:[#allocation8 + $0x3c0] sm:$0xff] }
 0x1e4   : > { %2467 = vmatprep.subr.bf16.mxu0 %v2466_v38  ;;  %v2374_v33 = vpack.c.bf16 %v997_v30, %v995_v29  ;;  %v2376_v38 = vpack.c.bf16 %v996_v35, %v994_v34  ;;  %v1030_v30 = vld [vmem:[#allocation8 + $0x4e0] sm:$0xff]  ;;  %v1037_v34 = vld [vmem:[#allocation8 + $0x518] sm:$0xff] }
 0x1e5   : > { %2325 = vmatpush1.bf16.msra.mxu1 %v2324_v44  ;;  %v1332_v44 = vld [vmem:[#allocation9 + $0xe8] sm:$0xff] }
 0x1e6   : > { %2327 = vmatprep.subr.bf16.mxu1 %v2326_v49  ;;  %v2470_v49 = vpack.c.bf16 %v1332_v44, %v1331_v22  ;;  %2469 = vmatpush3.bf16.msra.mxu0 %v2468_v47  ;;  %v1005_v22 = vld [vmem:[#allocation8 + $0x418] sm:$0xff]  ;;  %v861_v44 = vmul.f32 0.01, %v3230_v15  ;;  %v1002_v47 = vld [vmem:[#allocation8 + $0x400] sm:$0xff] }
 0x1e7   : > { %v2382_v46 = vpack.c.bf16 %v1005_v22, %v1003_v43  ;;  %v1038_v22 = vld [vmem:[#allocation8 + $0x520] sm:$0xff] }
 0x1e8   : > { %2471 = vmatprep.subr.bf16.mxu0 %v2470_v49  ;;  %v1007_v49 = vld [vmem:[#allocation8 + $0x428] sm:$0xff]  ;;  %v864_v51 = vsel %vm858_vm3, %v3230_v15, %v861_v44  ;;  %v1040_v44 = vld [vmem:[#allocation8 + $0x530] sm:$0xff] }
 0x1e9   : > { %2329 = vmatpush1.bf16.msra.mxu1 %v2328_v58  ;;  %v975_v58 = vld [vmem:[#allocation8 + $0x328] sm:$0xff] }
 0x1ea   : > { %2331 = vmatprep.subr.bf16.mxu1 %v2330_v63  ;;  %v2354_v61 = vpack.c.bf16 %v977_v59, %v975_v58  ;;  %v976_v63 = vld [vmem:[#allocation8 + $0x330] sm:$0xff]  ;;  %v2390_v59 = vpack.c.bf16 %v1013_v57, %v1011_v56  ;;  %v1051_v56 = vld [vmem:[#allocation8 + $0x588] sm:$0xff]  ;;  %v1053_v57 = vld [vmem:[#allocation8 + $0x598] sm:$0xff] }
 0x1eb   : > { %v2356_v2 = vpack.c.bf16 %v976_v63, %v974_v62  ;;  %v1015_v62 = vld [vmem:[#allocation8 + $0x468] sm:$0xff]  ;;  %v1017_v63 = vld [vmem:[#allocation8 + $0x478] sm:$0xff] }
 0x1ec   : > { %v2394_v0 = vpack.c.bf16 %v1017_v63, %v1015_v62  ;;  %v1055_v62 = vld [vmem:[#allocation8 + $0x5a8] sm:$0xff]  ;;  %v1057_v63 = vld [vmem:[#allocation8 + $0x5b8] sm:$0xff] }
 0x1ed   : > { %2333 = vmatpush1.bf16.msra.mxu1 %v2332_v6  ;;  %v983_v6 = vld [vmem:[#allocation8 + $0x368] sm:$0xff] }
 0x1ee   : > { %2335 = vmatprep.subr.bf16.mxu1 %v2334_v13  ;;  %v2362_v10 = vpack.c.bf16 %v985_v8, %v983_v6  ;;  %v984_v13 = vld [vmem:[#allocation8 + $0x370] sm:$0xff]  ;;  %v1018_v8 = vld [vmem:[#allocation8 + $0x480] sm:$0xff] }
 0x1ef   : > { %v2364_v18 = vpack.c.bf16 %v984_v13, %v982_v11  ;;  %v1025_v11 = vld [vmem:[#allocation8 + $0x4b8] sm:$0xff] }
 0x1f1   : > { %2337 = vmatpush1.bf16.msra.mxu1 %v2336_v23  ;;  %v991_v23 = vld [vmem:[#allocation8 + $0x3a8] sm:$0xff] }
 0x1f2   : > { %2339 = vmatprep.subr.bf16.mxu1 %v2338_v28  ;;  %v2370_v26 = vpack.c.bf16 %v993_v24, %v991_v23  ;;  %v992_v28 = vld [vmem:[#allocation8 + $0x3b0] sm:$0xff]  ;;  %v1026_v24 = vld [vmem:[#allocation8 + $0x4c0] sm:$0xff] }
 0x1f3   : > { %v2372_v31 = vpack.c.bf16 %v992_v28, %v990_v27  ;;  %v1033_v27 = vld [vmem:[#allocation8 + $0x4f8] sm:$0xff] }
 0x1f5   : > { %2341 = vmatpush1.bf16.msra.mxu1 %v2340_v36  ;;  %v999_v36 = vld [vmem:[#allocation8 + $0x3e8] sm:$0xff] }
 0x1f6   : > { %2343 = vmatprep.subr.bf16.mxu1 %v2342_v41  ;;  %v2378_v39 = vpack.c.bf16 %v1001_v37, %v999_v36  ;;  %v1000_v41 = vld [vmem:[#allocation8 + $0x3f0] sm:$0xff]  ;;  %v1034_v37 = vld [vmem:[#allocation8 + $0x500] sm:$0xff] }
 0x1f7   : > { %v2380_v45 = vpack.c.bf16 %v1000_v41, %v998_v40  ;;  %v1041_v40 = vld [vmem:[#allocation8 + $0x538] sm:$0xff] }
 0x1f9   : > { %2345 = vmatpush1.bf16.msra.mxu1 %v2344_v48  ;;  %v1004_v48 = vld [vmem:[#allocation8 + $0x410] sm:$0xff] }
 0x1fa   : > { %2347 = vmatprep.subr.bf16.mxu1 %v2346_v50  ;;  %v1009_v50 = vld [vmem:[#allocation8 + $0x438] sm:$0xff]  ;;  %v2384_v42 = vpack.c.bf16 %v1004_v48, %v1002_v47  ;;  %v2420_v47 = vpack.c.bf16 %v1040_v44, %v1038_v22  ;;  %v1353_v44 = vld [vmem:[#allocation9 + $0x190] sm:$0xff] }
 0x1fb   : > { %v2386_v52 = vpack.c.bf16 %v1009_v50, %v1007_v49  ;;  %v1042_v49 = vld [vmem:[#allocation8 + $0x540] sm:$0xff]  ;;  %v1044_v50 = vld [vmem:[#allocation8 + $0x550] sm:$0xff] }
 0x1fd   : > { %2349 = vmatpush1.bf16.msra.mxu1 %v2348_v54  ;;  %v1008_v54 = vld [vmem:[#allocation8 + $0x430] sm:$0xff] }
 0x1fe   : > { %2351 = vmatprep.subr.bf16.mxu1 %v2350_v55  ;;  %v870_v55 = vrot.slane %v864_v51, 1  ;;  %v2388_v58 = vpack.c.bf16 %v1008_v54, %v1006_v53  ;;  %v1046_v54 = vld [vmem:[#allocation8 + $0x560] sm:$0xff] }
 0x201   : > { %2353 = vmatpush1.bf16.msra.mxu1 %v2352_v60  ;;  %v1010_v60 = vld [vmem:[#allocation8 + $0x440] sm:$0xff] }
 0x202   : > { %2355 = vmatprep.subr.bf16.mxu1 %v2354_v61  ;;  %v1012_v61 = vld [vmem:[#allocation8 + $0x450] sm:$0xff] }
 0x203   : > { %v2392_v15 = vpack.c.bf16 %v1012_v61, %v1010_v60  ;;  %v1050_v60 = vld [vmem:[#allocation8 + $0x580] sm:$0xff]  ;;  %v1052_v61 = vld [vmem:[#allocation8 + $0x590] sm:$0xff] }
 0x205   : > { %2357 = vmatpush1.bf16.msra.mxu1 %v2356_v2  ;;  %v1016_v2 = vld [vmem:[#allocation8 + $0x470] sm:$0xff] }
 0x206   : > { %2359 = vmatprep.subr.bf16.mxu1 %v2358_v3  ;;  %v1019_v3 = vld [vmem:[#allocation8 + $0x488] sm:$0xff]  ;;  %v2396_v5 = vpack.c.bf16 %v1016_v2, %v1014_v1  ;;  %v1054_v1 = vld [vmem:[#allocation8 + $0x5a0] sm:$0xff]  ;;  %v1056_v2 = vld [vmem:[#allocation8 + $0x5b0] sm:$0xff] }
 0x207   : > { %v2398_v6 = vpack.c.bf16 %v1021_v4, %v1019_v3  ;;  %v1059_v3 = vld [vmem:[#allocation8 + $0x5c8] sm:$0xff]  ;;  %v1061_v4 = vld [vmem:[#allocation8 + $0x5d8] sm:$0xff] }
 0x209   : > { %2361 = vmatpush1.bf16.msra.mxu1 %v2360_v9  ;;  %v1020_v9 = vld [vmem:[#allocation8 + $0x490] sm:$0xff] }
 0x20a   : > { %2363 = vmatprep.subr.bf16.mxu1 %v2362_v10  ;;  %v1023_v10 = vld [vmem:[#allocation8 + $0x4a8] sm:$0xff]  ;;  %v2400_v13 = vpack.c.bf16 %v1020_v9, %v1018_v8  ;;  %v1058_v8 = vld [vmem:[#allocation8 + $0x5c0] sm:$0xff]  ;;  %v1060_v9 = vld [vmem:[#allocation8 + $0x5d0] sm:$0xff] }
 0x20b   : > { %v2402_v16 = vpack.c.bf16 %v1025_v11, %v1023_v10  ;;  %v1063_v10 = vld [vmem:[#allocation8 + $0x5e8] sm:$0xff]  ;;  %v1065_v11 = vld [vmem:[#allocation8 + $0x5f8] sm:$0xff] }
 0x20d   : > { %2365 = vmatpush1.bf16.msra.mxu1 %v2364_v18  ;;  %v1024_v18 = vld [vmem:[#allocation8 + $0x4b0] sm:$0xff] }
 0x20e   : > { %2367 = vmatprep.subr.bf16.mxu1 %v2366_v19  ;;  %v1027_v19 = vld [vmem:[#allocation8 + $0x4c8] sm:$0xff]  ;;  %v2404_v21 = vpack.c.bf16 %v1024_v18, %v1022_v17  ;;  %v1062_v17 = vld [vmem:[#allocation8 + $0x5e0] sm:$0xff]  ;;  %v1064_v18 = vld [vmem:[#allocation8 + $0x5f0] sm:$0xff] }
 0x20f   : > { %v2406_v23 = vpack.c.bf16 %v1029_v20, %v1027_v19  ;;  %v2444_v19 = vpack.c.bf16 %v1064_v18, %v1062_v17  ;;  %v869_v20 = vrot.slane %v3235_v32, 1  ;;  %v1066_v32 = vld [vmem:[%s3311_s4] sm:$0x3]  ;;  %v1347_v18 = vld [vmem:[#allocation9 + $0x160] sm:$0xff] }
 0x211   : > { %2369 = vmatpush1.bf16.msra.mxu1 %v2368_v25  ;;  %v1028_v25 = vld [vmem:[#allocation8 + $0x4d0] sm:$0xff] }
 0x212   : > { %2371 = vmatprep.subr.bf16.mxu1 %v2370_v26  ;;  %v1031_v26 = vld [vmem:[#allocation8 + $0x4e8] sm:$0xff]  ;;  %v2408_v28 = vpack.c.bf16 %v1028_v25, %v1026_v24  ;;  %v1333_v25 = vld [vmem:[#allocation9 + $0xf0] sm:$0xff] }
 0x213   : > { %v2410_v29 = vpack.c.bf16 %v1033_v27, %v1031_v26  ;;  %v1334_v26 = vld [vmem:[#allocation9 + $0xf8] sm:$0xff] }
 0x214   : > { %v2474_v27 = vpack.c.bf16 %v1334_v26, %v1333_v25  ;;  %v1349_v25 = vld [vmem:[#allocation9 + $0x170] sm:$0xff]  ;;  %v1350_v26 = vld [vmem:[#allocation9 + $0x178] sm:$0xff] }
 0x215   : > { %2373 = vmatpush1.bf16.msra.mxu1 %v2372_v31  ;;  %v1032_v31 = vld [vmem:[#allocation8 + $0x4f0] sm:$0xff] }
 0x216   : > { %2375 = vmatprep.subr.bf16.mxu1 %v2374_v33  ;;  %v1035_v33 = vld [vmem:[#allocation8 + $0x508] sm:$0xff]  ;;  %v2412_v35 = vpack.c.bf16 %v1032_v31, %v1030_v30  ;;  %v1351_v31 = vld [vmem:[#allocation9 + $0x180] sm:$0xff] }
 0x217   : > { %v2414_v36 = vpack.c.bf16 %v1037_v34, %v1035_v33  ;;  %v1352_v33 = vld [vmem:[#allocation9 + $0x188] sm:$0xff] }
 0x218   : > { %v2478_v34 = vpack.c.bf16 %v1352_v33, %v1351_v31  ;;  %v1524_v31 = vld [vmem:[#allocation11] sm:$0xff] }
 0x219   : > { %2377 = vmatpush1.bf16.msra.mxu1 %v2376_v38  ;;  %v1036_v38 = vld [vmem:[#allocation8 + $0x510] sm:$0xff] }
 0x21a   : > { %2379 = vmatprep.subr.bf16.mxu1 %v2378_v39  ;;  %v1039_v39 = vld [vmem:[#allocation8 + $0x528] sm:$0xff]  ;;  %v2416_v41 = vpack.c.bf16 %v1036_v38, %v1034_v37 }
 0x21b   : > { %v2418_v43 = vpack.c.bf16 %v1041_v40, %v1039_v39 }
 0x21d   : > { %2381 = vmatpush1.bf16.msra.mxu1 %v2380_v45  ;;  %v1043_v45 = vld [vmem:[#allocation8 + $0x548] sm:$0xff] }
 0x21e   : > { %2383 = vmatprep.subr.bf16.mxu1 %v2382_v46  ;;  %v1045_v46 = vld [vmem:[#allocation8 + $0x558] sm:$0xff] }
 0x21f   : > { %v2422_v48 = vpack.c.bf16 %v1045_v46, %v1043_v45  ;;  %v1354_v45 = vld [vmem:[#allocation9 + $0x198] sm:$0xff] }
 0x220   : > { %1214 = vmatmul.mubr.f32.vlgmr.msra.gmra.mrb[4].mxu1 %v864_v51  ;;  %v1047_v51 = vld [vmem:[#allocation8 + $0x568] sm:$0xff] }
 0x221   : > { %2385 = vmatpush1.bf16.msra.mxu1 %v2384_v42  ;;  %1284 = vmatprep.mubr.f32.mxu1 %v870_v55  ;;  %v1049_v42 = vld [vmem:[#allocation8 + $0x578] sm:$0xff]  ;;  %v1048_v55 = vld [vmem:[#allocation8 + $0x570] sm:$0xff] }
 0x222   : > { %2387 = vmatprep.subr.bf16.mxu1 %v2386_v52  ;;  %v2424_v52 = vpack.c.bf16 %v1044_v50, %v1042_v49  ;;  %v2426_v53 = vpack.c.bf16 %v1049_v42, %v1047_v51  ;;  %v2482_v49 = vpack.c.bf16 %v1354_v45, %v1353_v44  ;;  %v1337_v50 = vld [vmem:[#allocation9 + $0x110] sm:$0xff]  ;;  %v1338_v51 = vld [vmem:[#allocation9 + $0x118] sm:$0xff]  ;;  %v1528_v44 = vld [vmem:[#allocation11 + $0x20] sm:$0xff] }
 0x223   : > { %v1529_v45 = vld [vmem:[#allocation11 + $0x28] sm:$0xff] }
 0x225   : > { %2389 = vmatpush1.bf16.msra.mxu1 %v2388_v58  ;;  %v2428_v58 = vpack.c.bf16 %v1048_v55, %v1046_v54  ;;  %v1339_v55 = vld [vmem:[#allocation9 + $0x120] sm:$0xff] }
 0x226   : > { %2391 = vmatprep.subr.bf16.mxu1 %v2390_v59  ;;  %v2430_v59 = vpack.c.bf16 %v1053_v57, %v1051_v56  ;;  %v1340_v56 = vld [vmem:[#allocation9 + $0x128] sm:$0xff]  ;;  %v1357_v57 = vld [vmem:[#allocation9 + $0x1b0] sm:$0xff] }
 0x229   : > { %2393 = vmatpush1.bf16.msra.mxu1 %v2392_v15  ;;  %v2432_v15 = vpack.c.bf16 %v1052_v61, %v1050_v60  ;;  %v1341_v61 = vld [vmem:[#allocation9 + $0x130] sm:$0xff] }
 0x22a   : > { %2395 = vmatprep.subr.bf16.mxu1 %v2394_v0  ;;  %v2434_v0 = vpack.c.bf16 %v1057_v63, %v1055_v62  ;;  %v1342_v62 = vld [vmem:[#allocation9 + $0x138] sm:$0xff]  ;;  %v1359_v63 = vld [vmem:[#allocation9 + $0x1c0] sm:$0xff] }
 0x22d   : > { %2397 = vmatpush1.bf16.msra.mxu1 %v2396_v5  ;;  %v2436_v5 = vpack.c.bf16 %v1056_v2, %v1054_v1  ;;  %v1343_v2 = vld [vmem:[#allocation9 + $0x140] sm:$0xff] }
 0x22e   : > { %2399 = vmatprep.subr.bf16.mxu1 %v2398_v6  ;;  %v2438_v6 = vpack.c.bf16 %v1061_v4, %v1059_v3  ;;  %v1344_v3 = vld [vmem:[#allocation9 + $0x148] sm:$0xff]  ;;  %v1361_v4 = vld [vmem:[#allocation9 + $0x1d0] sm:$0xff] }
 0x231   : > { %2401 = vmatpush1.bf16.msra.mxu1 %v2400_v13  ;;  %v2440_v13 = vpack.c.bf16 %v1060_v9, %v1058_v8  ;;  %v1345_v9 = vld [vmem:[#allocation9 + $0x150] sm:$0xff] }
 0x232   : > { %2403 = vmatprep.subr.bf16.mxu1 %v2402_v16  ;;  %v2442_v16 = vpack.c.bf16 %v1065_v11, %v1063_v10  ;;  %v1346_v10 = vld [vmem:[#allocation9 + $0x158] sm:$0xff]  ;;  %v1363_v11 = vld [vmem:[#allocation9 + $0x1e0] sm:$0xff] }
 0x235   : > { %2405 = vmatpush1.bf16.msra.mxu1 %v2404_v21  ;;  %v1315_v21 = vld [vmem:[#allocation9 + $0x60] sm:$0xff] }
 0x236   : > { %2407 = vmatprep.subr.bf16.mxu1 %v2406_v23  ;;  %v1316_v23 = vld [vmem:[#allocation9 + $0x68] sm:$0xff] }
 0x237   : > { %v2472_v24 = vpack.c.bf16 %v1316_v23, %v1315_v21  ;;  %v1366_v21 = vld [vmem:[#allocation9 + $0x1f8] sm:$0xff] }
 0x239   : > { %2409 = vmatpush1.bf16.msra.mxu1 %v2408_v28  ;;  %2473 = vmatpush3.bf16.msra.mxu0 %v2472_v24  ;;  %v1317_v28 = vld [vmem:[#allocation9 + $0x70] sm:$0xff] }
 0x23a   : > { %2411 = vmatprep.subr.bf16.mxu1 %v2410_v29  ;;  %v1318_v29 = vld [vmem:[#allocation9 + $0x78] sm:$0xff]  ;;  %2475 = vmatprep.subr.bf16.mxu0 %v2474_v27  ;;  %v2508_v27 = vpack.c.bf16 %v1350_v26, %v1349_v25 }
 0x23b   : > { %v2476_v30 = vpack.c.bf16 %v1318_v29, %v1317_v28  ;;  %v1540_v29 = vld [vmem:[#allocation11 + $0x80] sm:$0xff] }
 0x23d   : > { %2413 = vmatpush1.bf16.msra.mxu1 %v2412_v35  ;;  %2477 = vmatpush3.bf16.msra.mxu0 %v2476_v30  ;;  %v1071_v35 = vrot.slane %v1066_v32, %v3227_v12  ;;  %v1541_v30 = vld [vmem:[#allocation11 + $0x88] sm:$0xff] }
 0x23e   : > { %2415 = vmatprep.subr.bf16.mxu1 %v2414_v36  ;;  %2479 = vmatprep.subr.bf16.mxu0 %v2478_v34  ;;  %v1075_v36 = vrot.slane %v1066_v32, %v565_v14  ;;  %v1355_v14 = vld [vmem:[#allocation9 + $0x1a0] sm:$0xff]  ;;  %v2510_v33 = vpack.c.bf16 %v1541_v30, %v1540_v29  ;;  %v1525_v34 = vld [vmem:[#allocation11 + $0x8] sm:$0xff]  ;;  %v1542_v32 = vld [vmem:[#allocation11 + $0x90] sm:$0xff] }
 0x23f   : > { %v1556_v29 = vld [vmem:[#allocation11 + $0x100] sm:$0xff]  ;;  %v1557_v30 = vld [vmem:[#allocation11 + $0x108] sm:$0xff] }
 0x241   : > { %2417 = vmatpush1.bf16.msra.mxu1 %v2416_v41  ;;  %v1335_v41 = vld [vmem:[#allocation9 + $0x100] sm:$0xff] }
 0x242   : > { %2419 = vmatprep.subr.bf16.mxu1 %v2418_v43  ;;  %v1336_v43 = vld [vmem:[#allocation9 + $0x108] sm:$0xff] }
 0x245   : > { %2421 = vmatpush1.bf16.msra.mxu1 %v2420_v47  ;;  %v2480_v47 = vpack.c.bf16 %v1336_v43, %v1335_v41  ;;  %v1545_v41 = vld [vmem:[#allocation11 + $0xa8] sm:$0xff] }
 0x246   : > { %2423 = vmatprep.subr.bf16.mxu1 %v2422_v48 }
 0x249   : > { %2425 = vmatpush1.bf16.msra.mxu1 %v2424_v52  ;;  %v1356_v52 = vld [vmem:[#allocation9 + $0x1a8] sm:$0xff] }
 0x24a   : > { %2427 = vmatprep.subr.bf16.mxu1 %v2426_v53  ;;  %v2484_v53 = vpack.c.bf16 %v1338_v51, %v1337_v50  ;;  %v2486_v54 = vpack.c.bf16 %v1356_v52, %v1355_v14  ;;  %v1530_v50 = vld [vmem:[#allocation11 + $0x30] sm:$0xff]  ;;  %v1531_v51 = vld [vmem:[#allocation11 + $0x38] sm:$0xff] }
 0x24b   : > { %v2524_v14 = vpack.c.bf16 %v1531_v51, %v1530_v50  ;;  %v1562_v50 = vld [vmem:[#allocation11 + $0x130] sm:$0xff]  ;;  %v1563_v51 = vld [vmem:[#allocation11 + $0x138] sm:$0xff] }
 0x24d   : > { %2429 = vmatpush1.bf16.msra.mxu1 %v2428_v58  ;;  %v1358_v58 = vld [vmem:[#allocation9 + $0x1b8] sm:$0xff] }
 0x24e   : > { %2431 = vmatprep.subr.bf16.mxu1 %v2430_v59  ;;  %v2488_v59 = vpack.c.bf16 %v1340_v56, %v1339_v55  ;;  %v2490_v60 = vpack.c.bf16 %v1358_v58, %v1357_v57  ;;  %v1550_v55 = vld [vmem:[#allocation11 + $0xd0] sm:$0xff]  ;;  %v1551_v56 = vld [vmem:[#allocation11 + $0xd8] sm:$0xff] }
 0x24f   : > { %v2530_v58 = vpack.c.bf16 %v1551_v56, %v1550_v55  ;;  %v1582_v55 = vld [vmem:[#allocation11 + $0x1d0] sm:$0xff]  ;;  %v1583_v56 = vld [vmem:[#allocation11 + $0x1d8] sm:$0xff] }
 0x251   : > { %2433 = vmatpush1.bf16.msra.mxu1 %v2432_v15  ;;  %v1360_v15 = vld [vmem:[#allocation9 + $0x1c8] sm:$0xff] }
 0x252   : > { %2435 = vmatprep.subr.bf16.mxu1 %v2434_v0  ;;  %v2492_v0 = vpack.c.bf16 %v1342_v62, %v1341_v61  ;;  %v2494_v1 = vpack.c.bf16 %v1360_v15, %v1359_v63  ;;  %v1552_v62 = vld [vmem:[#allocation11 + $0xe0] sm:$0xff]  ;;  %v1553_v63 = vld [vmem:[#allocation11 + $0xe8] sm:$0xff] }
 0x253   : > { %v2534_v15 = vpack.c.bf16 %v1553_v63, %v1552_v62  ;;  %v1585_v62 = vld [vmem:[#allocation11 + $0x1e8] sm:$0xff] }
 0x255   : > { %2437 = vmatpush1.bf16.msra.mxu1 %v2436_v5  ;;  %v1362_v5 = vld [vmem:[#allocation9 + $0x1d8] sm:$0xff] }
 0x256   : > { %2439 = vmatprep.subr.bf16.mxu1 %v2438_v6  ;;  %v2496_v6 = vpack.c.bf16 %v1344_v3, %v1343_v2  ;;  %v2498_v8 = vpack.c.bf16 %v1362_v5, %v1361_v4  ;;  %v1554_v3 = vld [vmem:[#allocation11 + $0xf0] sm:$0xff]  ;;  %v1555_v4 = vld [vmem:[#allocation11 + $0xf8] sm:$0xff] }
 0x257   : > { %v2538_v5 = vpack.c.bf16 %v1555_v4, %v1554_v3  ;;  %v1587_v3 = vld [vmem:[#allocation11 + $0x1f8] sm:$0xff] }
 0x259   : > { %2441 = vmatpush1.bf16.msra.mxu1 %v2440_v13  ;;  %v1364_v13 = vld [vmem:[#allocation9 + $0x1e8] sm:$0xff] }
 0x25a   : > { %2443 = vmatprep.subr.bf16.mxu1 %v2442_v16  ;;  %v2500_v16 = vpack.c.bf16 %v1346_v10, %v1345_v9  ;;  %v2502_v17 = vpack.c.bf16 %v1364_v13, %v1363_v11  ;;  %v1572_v10 = vld [vmem:[#allocation11 + $0x180] sm:$0xff]  ;;  %v1573_v11 = vld [vmem:[#allocation11 + $0x188] sm:$0xff] }
 0x25b   : > { %v2542_v13 = vpack.c.bf16 %v1573_v11, %v1572_v10 }
 0x25d   : > { %2445 = vmatpush1.bf16.msra.mxu1 %v2444_v19  ;;  %v1348_v19 = vld [vmem:[#allocation9 + $0x168] sm:$0xff] }
 0x25e   : > { %v2504_v23 = vpack.c.bf16 %v1348_v19, %v1347_v18 }
 0x260   : > { %1285 = vmatmul.mubr.f32.vlgmr.msra.gmra.mrb[4].mxu1 %v869_v20  ;;  %v1365_v20 = vld [vmem:[#allocation9 + $0x1f0] sm:$0xff] }
 0x261   : > { %v2506_v24 = vpack.c.bf16 %v1366_v21, %v1365_v20  ;;  %v1871_v21 = vld [vmem:[%s3313_s6] ss:$0 sm:$0xff] }
 0x333   : > { %v1286_v37 = vpop.f32.mrb[4].mxu1 }
 0x334   : > { %v2576_v38 = vadd.f32 %v1286_v37, %v1071_v35  ;;  %v1288_v39 = vpop.f32.mrb[5].mxu1  ;;  %v1543_v35 = vld [vmem:[#allocation11 + $0x98] sm:$0xff] }
 0x335   : > { %v2577_v40 = vadd.f32 %v1288_v39, %v1075_v36  ;;  %v2512_v36 = vpack.c.bf16 %v1525_v34, %v1524_v31  ;;  %v2514_v37 = vpack.c.bf16 %v1543_v35, %v1542_v32  ;;  %v1527_v39 = vld [vmem:[#allocation11 + $0x18] sm:$0xff]  ;;  %v1574_v31 = vld [vmem:[#allocation11 + $0x190] sm:$0xff]  ;;  %v2544_v35 = vpack.c.bf16 %v1557_v30, %v1556_v29 }
 0x336   : > { %v1293_v22 = vmul.f32 0.01, %v2576_v38  ;;  %vm1291_vm4 = vcmp.ge.f32.partialorder %v2576_v38, 0.0 }
 0x337   : > { %v1294_v46 = vmul.f32 0.01, %v2577_v40  ;;  %vm1292_vm5 = vcmp.ge.f32.partialorder %v2577_v40, 0.0 }
 0x338   : > { %v1295_v7 = vsel %vm1291_vm4, %v2576_v38, %v1293_v22  ;;  %v1526_v38 = vld [vmem:[#allocation11 + $0x10] sm:$0xff] }
 0x339   : > { %v1296_v48 = vsel %vm1292_vm5, %v2577_v40, %v1294_v46  ;;  %v1299_v28 = vrot.slane %v1295_v7, 1  ;;  %v1544_v40 = vld [vmem:[#allocation11 + $0xa0] sm:$0xff]  ;;  %v2516_v43 = vpack.c.bf16 %v1527_v39, %v1526_v38  ;;  %v1546_v46 = vld [vmem:[#allocation11 + $0xb0] sm:$0xff]  ;;  %v1559_v38 = vld [vmem:[#allocation11 + $0x118] sm:$0xff] }
 0x33a   : > { %v1300_v42 = vrot.slane %v1296_v48, 1  ;;  %1438 = vmatprep.mubr.f32.mxu0 %v1296_v48  ;;  %v2518_v22 = vpack.c.bf16 %v1545_v41, %v1544_v40  ;;  %v2520_v48 = vpack.c.bf16 %v1529_v45, %v1528_v44  ;;  %v1576_v40 = vld [vmem:[#allocation11 + $0x1a0] sm:$0xff]  ;;  %v1577_v41 = vld [vmem:[#allocation11 + $0x1a8] sm:$0xff] }
 0x33b   : > { %1439 = vmatmul.mubr.f32.vlgmr.msra.gmra.mrb[2].mxu0 %v1295_v7  ;;  %v1549_v7 = vld [vmem:[#allocation11 + $0xc8] sm:$0xff]  ;;  %v1560_v44 = vld [vmem:[#allocation11 + $0x120] sm:$0xff] }
 0x33c   : > { %2481 = vmatpush3.bf16.msra.mxu0 %v2480_v47  ;;  %1508 = vmatprep.mubr.f32.mxu0 %v1300_v42  ;;  %v1547_v47 = vld [vmem:[#allocation11 + $0xb8] sm:$0xff]  ;;  %v1548_v42 = vld [vmem:[#allocation11 + $0xc0] sm:$0xff]  ;;  %v1561_v45 = vld [vmem:[#allocation11 + $0x128] sm:$0xff] }
 0x33d   : > { %2483 = vmatprep.subr.bf16.mxu0 %v2482_v49  ;;  %v2522_v49 = vpack.c.bf16 %v1547_v47, %v1546_v46  ;;  %v2526_v52 = vpack.c.bf16 %v1549_v7, %v1548_v42  ;;  %v1578_v46 = vld [vmem:[#allocation11 + $0x1b0] sm:$0xff]  ;;  %v1579_v47 = vld [vmem:[#allocation11 + $0x1b8] sm:$0xff]  ;;  %v1580_v42 = vld [vmem:[#allocation11 + $0x1c0] sm:$0xff] }
 0x33e   : > { %v1581_v7 = vld [vmem:[#allocation11 + $0x1c8] sm:$0xff] }
 0x340   : > { %2485 = vmatpush3.bf16.msra.mxu0 %v2484_v53  ;;  %v1532_v53 = vld [vmem:[#allocation11 + $0x40] sm:$0xff] }
 0x341   : > { %2487 = vmatprep.subr.bf16.mxu0 %v2486_v54  ;;  %v1533_v54 = vld [vmem:[#allocation11 + $0x48] sm:$0xff] }
 0x342   : > { %v2528_v57 = vpack.c.bf16 %v1533_v54, %v1532_v53  ;;  %v1564_v53 = vld [vmem:[#allocation11 + $0x140] sm:$0xff]  ;;  %v1565_v54 = vld [vmem:[#allocation11 + $0x148] sm:$0xff] }
 0x344   : > { %2489 = vmatpush3.bf16.msra.mxu0 %v2488_v59  ;;  %v1534_v59 = vld [vmem:[#allocation11 + $0x50] sm:$0xff] }
 0x345   : > { %2491 = vmatprep.subr.bf16.mxu0 %v2490_v60  ;;  %v1535_v60 = vld [vmem:[#allocation11 + $0x58] sm:$0xff] }
 0x346   : > { %v2532_v61 = vpack.c.bf16 %v1535_v60, %v1534_v59  ;;  %v1566_v59 = vld [vmem:[#allocation11 + $0x150] sm:$0xff]  ;;  %v1567_v60 = vld [vmem:[#allocation11 + $0x158] sm:$0xff] }
 0x347   : > { %v2564_v63 = vpack.c.bf16 %v1567_v60, %v1566_v59 }
 0x348   : > { %2493 = vmatpush3.bf16.msra.mxu0 %v2492_v0  ;;  %v1536_v0 = vld [vmem:[#allocation11 + $0x60] sm:$0xff] }
 0x349   : > { %2495 = vmatprep.subr.bf16.mxu0 %v2494_v1  ;;  %v1537_v1 = vld [vmem:[#allocation11 + $0x68] sm:$0xff] }
 0x34a   : > { %v2536_v2 = vpack.c.bf16 %v1537_v1, %v1536_v0  ;;  %v1568_v0 = vld [vmem:[#allocation11 + $0x160] sm:$0xff]  ;;  %v1569_v1 = vld [vmem:[#allocation11 + $0x168] sm:$0xff] }
 0x34b   : > { %v2568_v4 = vpack.c.bf16 %v1569_v1, %v1568_v0 }
 0x34c   : > { %2497 = vmatpush3.bf16.msra.mxu0 %v2496_v6  ;;  %v1538_v6 = vld [vmem:[#allocation11 + $0x70] sm:$0xff] }
 0x34d   : > { %2499 = vmatprep.subr.bf16.mxu0 %v2498_v8  ;;  %v1539_v8 = vld [vmem:[#allocation11 + $0x78] sm:$0xff] }
 0x34e   : > { %v2540_v9 = vpack.c.bf16 %v1539_v8, %v1538_v6  ;;  %v1570_v6 = vld [vmem:[#allocation11 + $0x170] sm:$0xff]  ;;  %v1571_v8 = vld [vmem:[#allocation11 + $0x178] sm:$0xff] }
 0x350   : > { %2501 = vmatpush3.bf16.msra.mxu0 %v2500_v16  ;;  %v1588_v16 = vld [vmem:[#allocation2] sm:$0x1] }
 0x351   : > { %2503 = vmatprep.subr.bf16.mxu0 %v2502_v17  ;;  %v2914_v17 = vmov 0  }
 0x352   : > { %2681 = vset.pattern.permute.xlu0 %v2914_v17 }
 0x353   : > { %1591 = vperm.xlu0 %2681, %v1588_v16  }
 0x354   : > { %2505 = vmatpush3.bf16.msra.mxu0 %v2504_v23 }
 0x355   : > { %2507 = vmatprep.subr.bf16.mxu0 %v2506_v24 }
 0x358   : > { %2509 = vmatpush3.bf16.msra.mxu0 %v2508_v27 }
 0x359   : > { %2511 = vmatprep.subr.bf16.mxu0 %v2510_v33  ;;  %v1575_v33 = vld [vmem:[#allocation11 + $0x198] sm:$0xff] }
 0x35b   : > { %1509 = vmatmul.mubr.f32.vlgmr.msra.gmra.mrb[4].mxu0 %v1299_v28 }
 0x35c   : > { %2513 = vmatpush3.bf16.msra.mxu0 %v2512_v36  ;;  %v2546_v36 = vpack.c.bf16 %v1575_v33, %v1574_v31 }
 0x35d   : > { %2515 = vmatprep.subr.bf16.mxu0 %v2514_v37  ;;  %v1558_v37 = vld [vmem:[#allocation11 + $0x110] sm:$0xff] }
 0x360   : > { %2517 = vmatpush3.bf16.msra.mxu0 %v2516_v43  ;;  %v2548_v43 = vpack.c.bf16 %v1559_v38, %v1558_v37 }
 0x361   : > { %2519 = vmatprep.subr.bf16.mxu0 %v2518_v22  ;;  %v2550_v22 = vpack.c.bf16 %v1577_v41, %v1576_v40 }
 0x364   : > { %2521 = vmatpush3.bf16.msra.mxu0 %v2520_v48  ;;  %v2552_v48 = vpack.c.bf16 %v1561_v45, %v1560_v44 }
 0x365   : > { %2523 = vmatprep.subr.bf16.mxu0 %v2522_v49  ;;  %v2554_v49 = vpack.c.bf16 %v1579_v47, %v1578_v46 }
 0x368   : > { %2525 = vmatpush3.bf16.msra.mxu0 %v2524_v14  ;;  %v2556_v14 = vpack.c.bf16 %v1563_v51, %v1562_v50 }
 0x369   : > { %2527 = vmatprep.subr.bf16.mxu0 %v2526_v52  ;;  %v2558_v52 = vpack.c.bf16 %v1581_v7, %v1580_v42 }
 0x36c   : > { %2529 = vmatpush3.bf16.msra.mxu0 %v2528_v57  ;;  %v2560_v57 = vpack.c.bf16 %v1565_v54, %v1564_v53 }
 0x36d   : > { %2531 = vmatprep.subr.bf16.mxu0 %v2530_v58  ;;  %v2562_v58 = vpack.c.bf16 %v1583_v56, %v1582_v55 }
 0x370   : > { %2533 = vmatpush3.bf16.msra.mxu0 %v2532_v61  ;;  %v1584_v61 = vld [vmem:[#allocation11 + $0x1e0] sm:$0xff] }
 0x371   : > { %2535 = vmatprep.subr.bf16.mxu0 %v2534_v15  ;;  %v2566_v15 = vpack.c.bf16 %v1585_v62, %v1584_v61 }
 0x374   : > { %2537 = vmatpush3.bf16.msra.mxu0 %v2536_v2  ;;  %v1586_v2 = vld [vmem:[#allocation11 + $0x1f0] sm:$0xff] }
 0x375   : > { %2539 = vmatprep.subr.bf16.mxu0 %v2538_v5  ;;  %v2570_v5 = vpack.c.bf16 %v1587_v3, %v1586_v2 }
 0x378   : > { %2541 = vmatpush3.bf16.msra.mxu0 %v2540_v9  ;;  %v2572_v9 = vpack.c.bf16 %v1571_v8, %v1570_v6 }
 0x379   : > { %2543 = vmatprep.subr.bf16.mxu0 %v2542_v13 }
 0x3d2   : > { %v1592_v17 = vpop.permute.xlu0 %1591 }
 0x40e   : > { %v1959_v18 = vpop.f32.mrb[2].mxu0 }
 0x40f   : > { %v1960_v19 = vpop.f32.mrb[3].mxu0 }
 0x410   : > { %v1961_v20 = vadd.f32 %v1960_v19, %v1959_v18  ;;  %v1597_v18 = vrot.slane %v1592_v17, %v3227_v12 }
 0x412   : > { %v1441_v25 = vadd.f32 %v1961_v20, %v1871_v21 }
 0x42e   : > { %v1994_v23 = vpop.f32.mrb[4].mxu0 }
 0x42f   : > { %v1995_v24 = vpop.f32.mrb[5].mxu0 }
 0x430   : > { %v1996_v26 = vadd.f32 %v1995_v24, %v1994_v23 }
 0x432   : > { %v1511_v27 = vadd.f32 %v1996_v26, %v1441_v25 }
 0x434   : > { %vm1514_vm6 = vcmp.ge.f32.partialorder %v1511_v27, 0.0  ;;  %v1515_v28 = vmul.f32 0.01, %v1511_v27 }
 0x436   : > { %v3251_v34 = vsel %vm1514_vm6, %v1511_v27, %v1515_v28 }
 0x437   : > { %v1518_v32 = vrot.slane %v3251_v34, 1  ;;  %v1522_v39 = vrot.slane %v3251_v34, 3  ;;  %v1520_v10 = vrot.slane %v3251_v34, 2 }
 0x439   : > { %1662 = vmatprep.mubr.f32.mxu0 %v1518_v32 }
 0x43a   : > { %1663 = vmatmul.mubr.f32.vlgmr.msra.gmra.mrb[6].mxu0 %v3251_v34 }
 0x43b   : > { %2545 = vmatpush3.bf16.msra.mxu0 %v2544_v35  ;;  %1732 = vmatprep.mubr.f32.mxu0 %v1522_v39 }
 0x43c   : > { %2547 = vmatprep.subr.bf16.mxu0 %v2546_v36 }
 0x43f   : > { %2549 = vmatpush3.bf16.msra.mxu0 %v2548_v43 }
 0x440   : > { %2551 = vmatprep.subr.bf16.mxu0 %v2550_v22 }
 0x443   : > { %2553 = vmatpush3.bf16.msra.mxu0 %v2552_v48 }
 0x444   : > { %2555 = vmatprep.subr.bf16.mxu0 %v2554_v49 }
 0x447   : > { %2557 = vmatpush3.bf16.msra.mxu0 %v2556_v14 }
 0x448   : > { %2559 = vmatprep.subr.bf16.mxu0 %v2558_v52 }
 0x44b   : > { %2561 = vmatpush3.bf16.msra.mxu0 %v2560_v57 }
 0x44c   : > { %2563 = vmatprep.subr.bf16.mxu0 %v2562_v58 }
 0x44f   : > { %2565 = vmatpush3.bf16.msra.mxu0 %v2564_v63 }
 0x450   : > { %2567 = vmatprep.subr.bf16.mxu0 %v2566_v15 }
 0x453   : > { %2569 = vmatpush3.bf16.msra.mxu0 %v2568_v4 }
 0x454   : > { %2571 = vmatprep.subr.bf16.mxu0 %v2570_v5 }
 0x457   : > { %2573 = vmatpush3.bf16.msra.mxu0 %v2572_v9 }
 0x45a   : > { %1733 = vmatmul.mubr.f32.vlgmr.msra.gmra.mrb[8].mxu0 %v1520_v10 }
 0x50d   : > { %v2029_v11 = vpop.f32.mrb[6].mxu0 }
 0x50e   : > { %v2030_v13 = vpop.f32.mrb[7].mxu0 }
 0x50f   : > { %v2031_v16 = vadd.f32 %v2030_v13, %v2029_v11 }
 0x511   : > { %v1665_v21 = vadd.f32 %v2031_v16, %v1597_v18 }
 0x52d   : > { %v2064_v19 = vpop.f32.mrb[8].mxu0 }
 0x52e   : > { %v2065_v20 = vpop.f32.mrb[9].mxu0 }
 0x52f   : > { %v2066_v23 = vadd.f32 %v2065_v20, %v2064_v19 }
 0x531   : > { %v1735_v24 = vadd.f32 %v2066_v23, %v1665_v21 }
 0x533   : > { %1738 = vst [vmem:[%s406_s18] sm:$0x1] %v1735_v24 }
 0x534   : > { %2837 = shalt.err (!%p2834_p12)
}
 0x535   : > { %s2838_s1 = scalar_lea.hbm %s3263_s27, 16  ;;  %s2842_s24 = scalar_lea.hbm %s3316_s9, 32 }
 0x536   : > { %p2839_p13 = scmp.ne.s32.totalorder %s3263_s27, %s2838_s1  ;;  %p2843_p9 = scmp.lt.u32.totalorder %s3263_s27, %s3316_s9 }
 0x537   : > { %p2844_p4 = scmp.lt.u32.totalorder %s2842_s24, %s2838_s1  ;;  %p2846_p6 = scmp.lt.u32.totalorder %s2838_s1, %s3263_s27 }
 0x538   : > { %p2840_p3 = pnand %p2839_p13, %p3340_p0 }
 0x539   : > { %p2845_p8 = por %p2844_p4, %p2843_p9 }
 0x53a   : > { %p2841_p7 = pneg %p2840_p3 }
 0x53b   : > { %p2847_p2 = por %p2846_p6, %p2845_p8 }
 0x53d   : > { %p2848_p5 = pnand %p2847_p2, %p2841_p7 }
 0x53f   : > { %2851 = shalt.err (!%p2848_p5)
}
 0x540   : > { %2602 = dma.vmem_to_hbm [thread:$0]  (%p3340_p0), %s3265_s15, 16, %s3263_s27, %s1740_s21  }
 0x541 PF: > { %s1764_s22 = sand.u32 1, %s2886_s11   ;;  %p3341_p10 = scmp.ne.s32.totalorder %s3333_s10, 0 }
 0x542   : > { %p3342_p1 = scmp.ge.s32.totalorder %s2898_s14, 2  ;;  %s1765_s19 = scalar_lea.sflag [#allocation5], %s1764_s22 }
 0x544   : > { %p2622_p11 = pnand %p3342_p1, %p3341_p10 }
 0x546   : > { %2881 = dma.done.wait (!%p2622_p11), %s1765_s19, 16  }
 0x547   : > { %2883 = vsyncadd (!%p2622_p11), %s1765_s19, 4294967280  ;;  %p26_p12 = scmp.ge.s32.totalorder %s3111_s28, 4   ;;  %s3343_s11 = smov %s2890_s12 }
 0x548   : > { %s3344_s12 = smov %s2894_s13  ;;  %s3345_s13 = smov %s3122_s25 }
 0x549   : > { %s3346_s14 = smov %s3111_s28  ;;  %28 = sbr.rel (!%p26_p12) target bundleno = 10 (0xa), region = 117 }
 0x550   :  { %1769 = vsyncpa [#allocation4], 1 }
 0x551   :  { %1771 = vsyncpa [#allocation4 + $0x1], 1 }
 0x552   :  { %1772 = vsyncpa [#allocation7], 1 }
 0x553   :  { %1773 = vsyncpa [#allocation10], 1 }
 0x554   :  { %1774 = vsyncpa [#allocation5], 1 }
 0x555   :  { %1776 = vsyncpa [#allocation5 + $0x1], 1 }

</bundles_post_ra>
